<compile_context>
chip_gen: v7x
topology: tpu7x:2x2x1
jax: 0.10.0
libtpu: 0.0.40
codegen_flags: <defaults>
</compile_context>

<pallas_src>
import jax
import jax.numpy as jnp
from jax.experimental import pallas as pl
from jax.experimental.pallas import tpu as pltpu


def pose_ts_kernel(x_ref,
                   w1_ref, b1_ref, w2_ref, b2_ref, w3_ref, b3_ref,
                   w4_ref, b4_ref, w5_ref, b5_ref, w6_ref, b6_ref,
                   out_ref):
    bt, n, _ = x_ref.shape
    rows = bt * n
    cdt = w2_ref.dtype          # MXU compute dtype (bf16 on v6e/v7x, f32 otherwise)

    x = x_ref[...]                                        # (bt, n, 3) f32

    # --- Layer 1: Conv1d(3->128) + folded BN + ReLU, done on the VPU ----------
    # K=3 would be zero-padded to the MXU contraction width; three broadcast
    # FMAs keep the MXU free for the wide layers.
    w1 = w1_ref[...]                                      # (3, 128) f32
    h = (x[:, :, 0:1] * w1[0:1, :]
         + x[:, :, 1:2] * w1[1:2, :]
         + x[:, :, 2:3] * w1[2:3, :]) + b1_ref[...]       # (bt, n, 128)
    h = jnp.maximum(h, 0.0).reshape(rows, h.shape[-1])    # (rows, 128) f32

    # --- Layers 2-3: row-batched MXU matmuls, f32 accumulation -----------------
    h = jnp.dot(h.astype(cdt), w2_ref[...],
                preferred_element_type=jnp.float32) + b2_ref[...]
    h = jnp.maximum(h, 0.0)                               # (rows, 256)
    h = jnp.dot(h.astype(cdt), w3_ref[...],
                preferred_element_type=jnp.float32) + b3_ref[...]   # (rows, 512)

    # --- torch.max over the point dimension -> per-batch global feature --------
    g = jnp.max(h.reshape(bt, n, h.shape[-1]), axis=1)    # (bt, 512)

    # --- Pose_Ts head, batched over the tile (M = bt) --------------------------
    g = jnp.dot(g.astype(cdt), w4_ref[...],
                preferred_element_type=jnp.float32) + b4_ref[...]
    g = jnp.maximum(g, 0.0)                               # (bt, 256)
    g = jnp.dot(g.astype(cdt), w5_ref[...],
                preferred_element_type=jnp.float32) + b5_ref[...]
    # Dropout(p=0.2): identity in eval mode.              # (bt, 128)
    g = jnp.dot(g.astype(cdt), w6_ref[...],
                preferred_element_type=jnp.float32) + b6_ref[...]   # (bt, 6)
    out_ref[0] = g.astype(out_ref.dtype)


def fold_bn(w, b, gamma, beta, mean, var, eps=1e-5):
    """Fold eval-mode BatchNorm into a conv1d(k=1) expressed as x @ w + b.

    w: (Cin, Cout), b: (Cout,). Returns folded (w', b') with b' shaped (1, Cout)."""
    s = gamma / jnp.sqrt(var + eps)
    w_f = w * s[None, :]
    b_f = (b - mean) * s + beta
    return w_f, b_f[None, :]


def _choose_b_tile(B, N, max_rows=2048):
    """Rows per grid step capped (VMEM-friendly incl. v7x's 64 MiB), while still
    exposing >= 2 grid steps when the batch allows (v7x has 2 TensorCores)."""
    bt = max(1, min(B, max_rows // max(N, 1)))
    if B > 1:
        bt = min(bt, (B + 1) // 2)
    return bt


def pose_ts_forward(x, params, *, compute_dtype=jnp.bfloat16, b_tile=None):
    """x: (B, N, 3) float32 (PyTorch layout before the module's permute(0,2,1)).

    Returns (xt, xs), each (B, 3) float32."""
    x = x.astype(jnp.float32)
    B, N, C = x.shape
    assert C == 3
    (w1, b1, w2, b2, w3, b3, w4, b4, w5, b5, w6, b6) = params

    # MXU weights in the compute dtype (bf16 ~2x MXU throughput on v6e/v7x);
    # layer-1 weight and all biases stay f32 (VPU FMA / f32 accumulation).
    w2, w3, w4, w5, w6 = (w.astype(compute_dtype) for w in (w2, w3, w4, w5, w6))

    if b_tile is None:
        b_tile = _choose_b_tile(B, N)
    grid = (B + b_tile - 1) // b_tile
    B_pad = grid * b_tile
    if B_pad != B:
        # Pad the batch; padded elements compute garbage that is sliced off
        # (the per-batch max never mixes rows across batch elements).
        x = jnp.pad(x, ((0, B_pad - B), (0, 0), (0, 0)))

    # Constant index maps: weight/bias blocks never change across grid steps,
    # so they stay resident in VMEM and are not re-DMA'd per step.
    full = lambda arr: pl.BlockSpec(arr.shape, lambda i: (0,) * arr.ndim)

    out = pl.pallas_call(
        pose_ts_kernel,
        out_shape=jax.ShapeDtypeStruct((grid, b_tile, 6), jnp.float32),
        grid=(grid,),
        in_specs=[
            pl.BlockSpec((b_tile, N, 3), lambda i: (i, 0, 0)),
            full(w1), full(b1), full(w2), full(b2), full(w3), full(b3),
            full(w4), full(b4), full(w5), full(b5), full(w6), full(b6),
        ],
        out_specs=pl.BlockSpec((1, b_tile, 6), lambda i: (i, 0, 0)),
        compiler_params=pltpu.CompilerParams(
            dimension_semantics=("parallel",)),
    )(x, w1, b1, w2, b2, w3, b3, w4, b4, w5, b5, w6, b6)

    out = out.reshape(B_pad, 6)[:B]
    xt = out[:, 0:3]
    xs = out[:, 3:6]
    return xt, xs


def make_params(key):
    """Deterministic synthetic parameters with the module's shapes, BN folded."""
    dims = [(3, 128), (128, 256), (256, 512),      # Point_center convs (with BN)
            (512, 256), (256, 128), (128, 6)]      # Pose_Ts head convs
    has_bn = [True, True, True, True, True, False]
    keys = jax.random.split(key, len(dims) * 6)
    params = []
    for i, ((cin, cout), bn) in enumerate(zip(dims, has_bn)):
        k = keys[i * 6:(i + 1) * 6]
        w = jax.random.normal(k[0], (cin, cout), jnp.float32) * 0.1   # conv weight (Cin,Cout)
        b = jax.random.normal(k[1], (cout,), jnp.float32) * 0.1       # conv bias
        if bn:
            gamma = 1.0 + 0.1 * jax.random.normal(k[2], (cout,), jnp.float32)
            beta = 0.1 * jax.random.normal(k[3], (cout,), jnp.float32)
            mean = 0.1 * jax.random.normal(k[4], (cout,), jnp.float32)
            var = jnp.abs(jax.random.normal(k[5], (cout,), jnp.float32)) + 0.5
            w, b2d = fold_bn(w, b, gamma, beta, mean, var)
            params += [w, b2d]
        else:
            params += [w, b[None, :]]
    return tuple(params)


def ref_forward(x, params, compute_dtype=jnp.float32):
    """Pure-JAX reference with the same (BN-folded, eval-mode) semantics and the
    same dtype flow as the kernel (bf16 matmul inputs, f32 accumulation)."""
    (w1, b1, w2, b2, w3, b3, w4, b4, w5, b5, w6, b6) = params
    cdt = compute_dtype
    f32 = jnp.float32
    # Layer 1 as the same f32 broadcast-FMA the kernel uses.
    h = (x[..., 0:1] * w1[0:1, :] + x[..., 1:2] * w1[1:2, :]
         + x[..., 2:3] * w1[2:3, :]) + b1
    h = jnp.maximum(h, 0.0)
    h = jnp.maximum(jnp.einsum('bnc,cd->bnd', h.astype(cdt), w2.astype(cdt),
                               preferred_element_type=f32) + b2, 0.0)
    h = jnp.einsum('bnc,cd->bnd', h.astype(cdt), w3.astype(cdt),
                   preferred_element_type=f32) + b3
    g = jnp.max(h, axis=1)                                # (B, 512)
    g = jnp.maximum(jnp.dot(g.astype(cdt), w4.astype(cdt),
                            preferred_element_type=f32) + b4, 0.0)
    g = jnp.dot(g.astype(cdt), w5.astype(cdt), preferred_element_type=f32) + b5
    g = jnp.dot(g.astype(cdt), w6.astype(cdt), preferred_element_type=f32) + b6
    return g[:, 0:3], g[:, 3:6]


if __name__ == "__main__":
    key = jax.random.PRNGKey(0)
    k_x, k_p, k_x2 = jax.random.split(key, 3)

    params = make_params(k_p)

    # Primary run: bf16 MXU inputs (f32 accumulation), b_tile=2 -> grid of 2 steps.
    B, N = 4, 32
    x = jax.random.normal(k_x, (B, N, 3), jnp.float32)   # (batch, points, xyz)
    xt, xs = pose_ts_forward(x, params, compute_dtype=jnp.bfloat16)
    jax.block_until_ready((xt, xs))
    xt_ref, xs_ref = ref_forward(x, params, compute_dtype=jnp.bfloat16)
    assert xt.shape == (B, 3) and xs.shape == (B, 3)
    assert jnp.allclose(xt, xt_ref, atol=2e-3, rtol=2e-3)
    assert jnp.allclose(xs, xs_ref, atol=2e-3, rtol=2e-3)

    # Secondary run: pure f32 path (v5e-friendly) + a batch needing padding (B=3 -> 4).
    B2, N2 = 3, 16
    x2 = jax.random.normal(k_x2, (B2, N2, 3), jnp.float32)
    xt2, xs2 = pose_ts_forward(x2, params, compute_dtype=jnp.float32)
    jax.block_until_ready((xt2, xs2))
    xt2_ref, xs2_ref = ref_forward(x2, params, compute_dtype=jnp.float32)
    assert xt2.shape == (B2, 3) and xs2.shape == (B2, 3)
    assert jnp.allclose(xt2, xt2_ref, atol=1e-3, rtol=1e-3)
    assert jnp.allclose(xs2, xs2_ref, atol=1e-3, rtol=1e-3)

    print("KERNEL_OK")
</pallas_src>

<mosaic_0001>
module attributes {stable_mosaic.version = 11 : i64} {
  func.func @pose_ts_kernel(%arg0: i32, %arg1: memref<2x32x3xf32, #tpu.memory_space<vmem>>, %arg2: memref<3x128xf32, #tpu.memory_space<vmem>>, %arg3: memref<1x128xf32, #tpu.memory_space<vmem>>, %arg4: memref<128x256xbf16, #tpu.memory_space<vmem>>, %arg5: memref<1x256xf32, #tpu.memory_space<vmem>>, %arg6: memref<256x512xbf16, #tpu.memory_space<vmem>>, %arg7: memref<1x512xf32, #tpu.memory_space<vmem>>, %arg8: memref<512x256xbf16, #tpu.memory_space<vmem>>, %arg9: memref<1x256xf32, #tpu.memory_space<vmem>>, %arg10: memref<256x128xbf16, #tpu.memory_space<vmem>>, %arg11: memref<1x128xf32, #tpu.memory_space<vmem>>, %arg12: memref<128x6xbf16, #tpu.memory_space<vmem>>, %arg13: memref<1x6xf32, #tpu.memory_space<vmem>>, %arg14: memref<1x2x6xf32, #tpu.memory_space<vmem>>) attributes {dimension_semantics = [#tpu.dimension_semantics<parallel>], iteration_bounds = array<i64: 2>, scalar_prefetch = 0 : i64, scratch_operands = 0 : i64, tpu.core_type = #tpu.core_type<tc>, window_params = [{transform_indices = @transform_0, window_bounds = array<i64: 2, 32, 3>}, {pipeline_mode = #tpu.pipeline_mode<synchronous>, transform_indices = @transform_1, window_bounds = array<i64: 3, 128>}, {pipeline_mode = #tpu.pipeline_mode<synchronous>, transform_indices = @transform_2, window_bounds = array<i64: 1, 128>}, {pipeline_mode = #tpu.pipeline_mode<synchronous>, transform_indices = @transform_3, window_bounds = array<i64: 128, 256>}, {pipeline_mode = #tpu.pipeline_mode<synchronous>, transform_indices = @transform_4, window_bounds = array<i64: 1, 256>}, {pipeline_mode = #tpu.pipeline_mode<synchronous>, transform_indices = @transform_5, window_bounds = array<i64: 256, 512>}, {pipeline_mode = #tpu.pipeline_mode<synchronous>, transform_indices = @transform_6, window_bounds = array<i64: 1, 512>}, {pipeline_mode = #tpu.pipeline_mode<synchronous>, transform_indices = @transform_7, window_bounds = array<i64: 512, 256>}, {pipeline_mode = #tpu.pipeline_mode<synchronous>, transform_indices = @transform_8, window_bounds = array<i64: 1, 256>}, {pipeline_mode = #tpu.pipeline_mode<synchronous>, transform_indices = @transform_9, window_bounds = array<i64: 256, 128>}, {pipeline_mode = #tpu.pipeline_mode<synchronous>, transform_indices = @transform_10, window_bounds = array<i64: 1, 128>}, {pipeline_mode = #tpu.pipeline_mode<synchronous>, transform_indices = @transform_11, window_bounds = array<i64: 128, 6>}, {pipeline_mode = #tpu.pipeline_mode<synchronous>, transform_indices = @transform_12, window_bounds = array<i64: 1, 6>}, {transform_indices = @transform_13, window_bounds = array<i64: 1, 2, 6>}]} {
    %c0 = arith.constant 0 : index
    %c0_0 = arith.constant 0 : index
    %c0_1 = arith.constant 0 : index
    %0 = vector.load %arg1[%c0, %c0_0, %c0_1] : memref<2x32x3xf32, #tpu.memory_space<vmem>>, vector<2x32x3xf32>
    %c0_2 = arith.constant 0 : index
    %c0_3 = arith.constant 0 : index
    %1 = vector.load %arg2[%c0_2, %c0_3] : memref<3x128xf32, #tpu.memory_space<vmem>>, vector<3x128xf32>
    %2 = vector.extract_strided_slice %0 {offsets = [0, 0, 0], sizes = [2, 32, 1], strides = [1, 1, 1]} : vector<2x32x3xf32> to vector<2x32x1xf32>
    %3 = vector.extract_strided_slice %1 {offsets = [0, 0], sizes = [1, 128], strides = [1, 1]} : vector<3x128xf32> to vector<1x128xf32>
    %4 = vector.shape_cast %3 : vector<1x128xf32> to vector<1x1x128xf32>
    %5 = vector.broadcast %2 : vector<2x32x1xf32> to vector<2x32x128xf32>
    %6 = vector.broadcast %4 : vector<1x1x128xf32> to vector<2x32x128xf32>
    %7 = arith.mulf %5, %6 : vector<2x32x128xf32>
    %8 = vector.extract_strided_slice %0 {offsets = [0, 0, 1], sizes = [2, 32, 1], strides = [1, 1, 1]} : vector<2x32x3xf32> to vector<2x32x1xf32>
    %9 = vector.extract_strided_slice %1 {offsets = [1, 0], sizes = [1, 128], strides = [1, 1]} : vector<3x128xf32> to vector<1x128xf32>
    %10 = vector.shape_cast %9 : vector<1x128xf32> to vector<1x1x128xf32>
    %11 = vector.broadcast %8 : vector<2x32x1xf32> to vector<2x32x128xf32>
    %12 = vector.broadcast %10 : vector<1x1x128xf32> to vector<2x32x128xf32>
    %13 = arith.mulf %11, %12 : vector<2x32x128xf32>
    %14 = arith.addf %7, %13 : vector<2x32x128xf32>
    %15 = vector.extract_strided_slice %0 {offsets = [0, 0, 2], sizes = [2, 32, 1], strides = [1, 1, 1]} : vector<2x32x3xf32> to vector<2x32x1xf32>
    %16 = vector.extract_strided_slice %1 {offsets = [2, 0], sizes = [1, 128], strides = [1, 1]} : vector<3x128xf32> to vector<1x128xf32>
    %17 = vector.shape_cast %16 : vector<1x128xf32> to vector<1x1x128xf32>
    %18 = vector.broadcast %15 : vector<2x32x1xf32> to vector<2x32x128xf32>
    %19 = vector.broadcast %17 : vector<1x1x128xf32> to vector<2x32x128xf32>
    %20 = arith.mulf %18, %19 : vector<2x32x128xf32>
    %21 = arith.addf %14, %20 : vector<2x32x128xf32>
    %c0_4 = arith.constant 0 : index
    %c0_5 = arith.constant 0 : index
    %22 = vector.load %arg3[%c0_4, %c0_5] : memref<1x128xf32, #tpu.memory_space<vmem>>, vector<1x128xf32>
    %23 = vector.shape_cast %22 : vector<1x128xf32> to vector<1x1x128xf32>
    %24 = vector.broadcast %23 : vector<1x1x128xf32> to vector<2x32x128xf32>
    %25 = arith.addf %21, %24 : vector<2x32x128xf32>
    %cst = arith.constant 0.000000e+00 : f32
    %26 = vector.broadcast %cst : f32 to vector<2x32x128xf32>
    %27 = arith.maximumf %25, %26 : vector<2x32x128xf32>
    %28 = vector.shape_cast %27 : vector<2x32x128xf32> to vector<64x128xf32>
    %29 = arith.truncf %28 : vector<64x128xf32> to vector<64x128xbf16>
    %c0_6 = arith.constant 0 : index
    %c0_7 = arith.constant 0 : index
    %30 = vector.load %arg4[%c0_6, %c0_7] : memref<128x256xbf16, #tpu.memory_space<vmem>>, vector<128x256xbf16>
    %cst_8 = arith.constant dense<0.000000e+00> : vector<64x256xf32>
    %31 = tpu.matmul %29, %30, %cst_8 {dimension_numbers = #tpu.dot_dimension_numbers<[1], [0], [0], [1], [0, 0, 1, 1], [], []>} : vector<64x128xbf16>, vector<128x256xbf16>, vector<64x256xf32> -> vector<64x256xf32>
    %c0_9 = arith.constant 0 : index
    %c0_10 = arith.constant 0 : index
    %32 = vector.load %arg5[%c0_9, %c0_10] : memref<1x256xf32, #tpu.memory_space<vmem>>, vector<1x256xf32>
    %33 = vector.broadcast %32 : vector<1x256xf32> to vector<64x256xf32>
    %34 = arith.addf %31, %33 : vector<64x256xf32>
    %cst_11 = arith.constant 0.000000e+00 : f32
    %35 = vector.broadcast %cst_11 : f32 to vector<64x256xf32>
    %36 = arith.maximumf %34, %35 : vector<64x256xf32>
    %37 = arith.truncf %36 : vector<64x256xf32> to vector<64x256xbf16>
    %c0_12 = arith.constant 0 : index
    %c0_13 = arith.constant 0 : index
    %38 = vector.load %arg6[%c0_12, %c0_13] : memref<256x512xbf16, #tpu.memory_space<vmem>>, vector<256x512xbf16>
    %cst_14 = arith.constant dense<0.000000e+00> : vector<64x512xf32>
    %39 = tpu.matmul %37, %38, %cst_14 {dimension_numbers = #tpu.dot_dimension_numbers<[1], [0], [0], [1], [0, 0, 1, 1], [], []>} : vector<64x256xbf16>, vector<256x512xbf16>, vector<64x512xf32> -> vector<64x512xf32>
    %c0_15 = arith.constant 0 : index
    %c0_16 = arith.constant 0 : index
    %40 = vector.load %arg7[%c0_15, %c0_16] : memref<1x512xf32, #tpu.memory_space<vmem>>, vector<1x512xf32>
    %41 = vector.broadcast %40 : vector<1x512xf32> to vector<64x512xf32>
    %42 = arith.addf %39, %41 : vector<64x512xf32>
    %43 = vector.shape_cast %42 : vector<64x512xf32> to vector<2x32x512xf32>
    %cst_17 = arith.constant dense<0xFF800000> : vector<2x512xf32>
    %44 = vector.multi_reduction <maximumf>, %43, %cst_17 [1] : vector<2x32x512xf32> to vector<2x512xf32>
    %45 = arith.truncf %44 : vector<2x512xf32> to vector<2x512xbf16>
    %c0_18 = arith.constant 0 : index
    %c0_19 = arith.constant 0 : index
    %46 = vector.load %arg8[%c0_18, %c0_19] : memref<512x256xbf16, #tpu.memory_space<vmem>>, vector<512x256xbf16>
    %cst_20 = arith.constant dense<0.000000e+00> : vector<2x256xf32>
    %47 = tpu.matmul %45, %46, %cst_20 {dimension_numbers = #tpu.dot_dimension_numbers<[1], [0], [0], [1], [0, 0, 1, 1], [], []>} : vector<2x512xbf16>, vector<512x256xbf16>, vector<2x256xf32> -> vector<2x256xf32>
    %c0_21 = arith.constant 0 : index
    %c0_22 = arith.constant 0 : index
    %48 = vector.load %arg9[%c0_21, %c0_22] : memref<1x256xf32, #tpu.memory_space<vmem>>, vector<1x256xf32>
    %49 = vector.broadcast %48 : vector<1x256xf32> to vector<2x256xf32>
    %50 = arith.addf %47, %49 : vector<2x256xf32>
    %cst_23 = arith.constant 0.000000e+00 : f32
    %51 = vector.broadcast %cst_23 : f32 to vector<2x256xf32>
    %52 = arith.maximumf %50, %51 : vector<2x256xf32>
    %53 = arith.truncf %52 : vector<2x256xf32> to vector<2x256xbf16>
    %c0_24 = arith.constant 0 : index
    %c0_25 = arith.constant 0 : index
    %54 = vector.load %arg10[%c0_24, %c0_25] : memref<256x128xbf16, #tpu.memory_space<vmem>>, vector<256x128xbf16>
    %cst_26 = arith.constant dense<0.000000e+00> : vector<2x128xf32>
    %55 = tpu.matmul %53, %54, %cst_26 {dimension_numbers = #tpu.dot_dimension_numbers<[1], [0], [0], [1], [0, 0, 1, 1], [], []>} : vector<2x256xbf16>, vector<256x128xbf16>, vector<2x128xf32> -> vector<2x128xf32>
    %c0_27 = arith.constant 0 : index
    %c0_28 = arith.constant 0 : index
    %56 = vector.load %arg11[%c0_27, %c0_28] : memref<1x128xf32, #tpu.memory_space<vmem>>, vector<1x128xf32>
    %57 = vector.broadcast %56 : vector<1x128xf32> to vector<2x128xf32>
    %58 = arith.addf %55, %57 : vector<2x128xf32>
    %59 = arith.truncf %58 : vector<2x128xf32> to vector<2x128xbf16>
    %c0_29 = arith.constant 0 : index
    %c0_30 = arith.constant 0 : index
    %60 = vector.load %arg12[%c0_29, %c0_30] : memref<128x6xbf16, #tpu.memory_space<vmem>>, vector<128x6xbf16>
    %cst_31 = arith.constant dense<0.000000e+00> : vector<2x6xf32>
    %61 = tpu.matmul %59, %60, %cst_31 {dimension_numbers = #tpu.dot_dimension_numbers<[1], [0], [0], [1], [0, 0, 1, 1], [], []>} : vector<2x128xbf16>, vector<128x6xbf16>, vector<2x6xf32> -> vector<2x6xf32>
    %c0_32 = arith.constant 0 : index
    %c0_33 = arith.constant 0 : index
    %62 = vector.load %arg13[%c0_32, %c0_33] : memref<1x6xf32, #tpu.memory_space<vmem>>, vector<1x6xf32>
    %63 = vector.broadcast %62 : vector<1x6xf32> to vector<2x6xf32>
    %64 = arith.addf %61, %63 : vector<2x6xf32>
    %c0_34 = arith.constant 0 : index
    %c0_35 = arith.constant 0 : index
    %c0_36 = arith.constant 0 : index
    %65 = vector.load %arg14[%c0_34, %c0_35, %c0_36] : memref<1x2x6xf32, #tpu.memory_space<vmem>>, vector<1x2x6xf32>
    %66 = vector.shape_cast %65 : vector<1x2x6xf32> to vector<2x6xf32>
    %67 = vector.shape_cast %64 : vector<2x6xf32> to vector<1x2x6xf32>
    tpu.vector_store %arg14[%c0_34, %c0_35, %c0_36], %67 {strides = array<i32>} : memref<1x2x6xf32, #tpu.memory_space<vmem>>, vector<1x2x6xf32>,
    return
  }
  func.func @transform_0(%arg0: i32) -> (i32, i32, i32) {
    %c0_i32 = arith.constant 0 : i32
    %c0_i32_0 = arith.constant 0 : i32
    %c0_i32_1 = arith.constant 0 : i32
    return %arg0, %c0_i32, %c0_i32_0 : i32, i32, i32
  }
  func.func @transform_1(%arg0: i32) -> (i32, i32) {
    %c0_i32 = arith.constant 0 : i32
    %c0_i32_0 = arith.constant 0 : i32
    %c0_i32_1 = arith.constant 0 : i32
    return %c0_i32, %c0_i32_0 : i32, i32
  }
  func.func @transform_2(%arg0: i32) -> (i32, i32) {
    %c0_i32 = arith.constant 0 : i32
    %c0_i32_0 = arith.constant 0 : i32
    %c0_i32_1 = arith.constant 0 : i32
    return %c0_i32, %c0_i32_0 : i32, i32
  }
  func.func @transform_3(%arg0: i32) -> (i32, i32) {
    %c0_i32 = arith.constant 0 : i32
    %c0_i32_0 = arith.constant 0 : i32
    %c0_i32_1 = arith.constant 0 : i32
    return %c0_i32, %c0_i32_0 : i32, i32
  }
  func.func @transform_4(%arg0: i32) -> (i32, i32) {
    %c0_i32 = arith.constant 0 : i32
    %c0_i32_0 = arith.constant 0 : i32
    %c0_i32_1 = arith.constant 0 : i32
    return %c0_i32, %c0_i32_0 : i32, i32
  }
  func.func @transform_5(%arg0: i32) -> (i32, i32) {
    %c0_i32 = arith.constant 0 : i32
    %c0_i32_0 = arith.constant 0 : i32
    %c0_i32_1 = arith.constant 0 : i32
    return %c0_i32, %c0_i32_0 : i32, i32
  }
  func.func @transform_6(%arg0: i32) -> (i32, i32) {
    %c0_i32 = arith.constant 0 : i32
    %c0_i32_0 = arith.constant 0 : i32
    %c0_i32_1 = arith.constant 0 : i32
    return %c0_i32, %c0_i32_0 : i32, i32
  }
  func.func @transform_7(%arg0: i32) -> (i32, i32) {
    %c0_i32 = arith.constant 0 : i32
    %c0_i32_0 = arith.constant 0 : i32
    %c0_i32_1 = arith.constant 0 : i32
    return %c0_i32, %c0_i32_0 : i32, i32
  }
  func.func @transform_8(%arg0: i32) -> (i32, i32) {
    %c0_i32 = arith.constant 0 : i32
    %c0_i32_0 = arith.constant 0 : i32
    %c0_i32_1 = arith.constant 0 : i32
    return %c0_i32, %c0_i32_0 : i32, i32
  }
  func.func @transform_9(%arg0: i32) -> (i32, i32) {
    %c0_i32 = arith.constant 0 : i32
    %c0_i32_0 = arith.constant 0 : i32
    %c0_i32_1 = arith.constant 0 : i32
    return %c0_i32, %c0_i32_0 : i32, i32
  }
  func.func @transform_10(%arg0: i32) -> (i32, i32) {
    %c0_i32 = arith.constant 0 : i32
    %c0_i32_0 = arith.constant 0 : i32
    %c0_i32_1 = arith.constant 0 : i32
    return %c0_i32, %c0_i32_0 : i32, i32
  }
  func.func @transform_11(%arg0: i32) -> (i32, i32) {
    %c0_i32 = arith.constant 0 : i32
    %c0_i32_0 = arith.constant 0 : i32
    %c0_i32_1 = arith.constant 0 : i32
    return %c0_i32, %c0_i32_0 : i32, i32
  }
  func.func @transform_12(%arg0: i32) -> (i32, i32) {
    %c0_i32 = arith.constant 0 : i32
    %c0_i32_0 = arith.constant 0 : i32
    %c0_i32_1 = arith.constant 0 : i32
    return %c0_i32, %c0_i32_0 : i32, i32
  }
  func.func @transform_13(%arg0: i32) -> (i32, i32, i32) {
    %c0_i32 = arith.constant 0 : i32
    %c0_i32_0 = arith.constant 0 : i32
    %c0_i32_1 = arith.constant 0 : i32
    return %arg0, %c0_i32, %c0_i32_0 : i32, i32, i32
  }
}

</mosaic_0001>

<bundles_post_ra>
// kernel: tpu_custom_call.1
= control target key start
LH: loop header
LB: loop body
LE: loop exit
PB: predicated region body
PF: predicated region fallthrough
CT: control target
= control target key end

     0   :  { %s3657_s0 = inlined_call_operand.vmem [shape: f32[4,32,3], index: 0, kind: input, shape index: {}]   ;;  %s3658_s1 = inlined_call_operand.vmem [shape: f32[3,128], index: 1, kind: input, shape index: {}]   ;;  %s3659_s2 = inlined_call_operand.vmem [shape: f32[1,128], index: 2, kind: input, shape index: {}]   ;;  %s3660_s3 = inlined_call_operand.vmem [shape: bf16[128,256], index: 3, kind: input, shape index: {}]   ;;  %s3661_s4 = inlined_call_operand.vmem [shape: f32[1,256], index: 4, kind: input, shape index: {}]   ;;  %s3662_s5 = inlined_call_operand.hbm [shape: bf16[256,512], index: 5, kind: input, shape index: {}]   ;;  %s3663_s6 = inlined_call_operand.vmem [shape: f32[1,512], index: 6, kind: input, shape index: {}]   ;;  %s3664_s7 = inlined_call_operand.hbm [shape: bf16[512,256], index: 7, kind: input, shape index: {}]   ;;  %s3665_s8 = inlined_call_operand.vmem [shape: f32[1,256], index: 8, kind: input, shape index: {}]   ;;  %s3666_s9 = inlined_call_operand.hbm [shape: bf16[256,128], index: 9, kind: input, shape index: {}]   ;;  %s3667_s10 = inlined_call_operand.vmem [shape: f32[1,128], index: 10, kind: input, shape index: {}]   ;;  %s3668_s11 = inlined_call_operand.vmem [shape: bf16[128,6], index: 11, kind: input, shape index: {}]   ;;  %s3669_s12 = inlined_call_operand.vmem [shape: f32[1,6], index: 12, kind: input, shape index: {}]   ;;  %s3670_s13 = inlined_call_operand.hbm [shape: f32[2,2,6], index: 13, kind: output, shape index: {}]  }
   0x1   :  { %3683 = sst [smem:[#allocation19_spill]] %s3664_s7 }
   0x2   :  { %3684 = sst [smem:[#allocation20_spill]] %s3670_s13 }
   0x3   :  { %18 = vsyncpa [#allocation3], 0 }
   0x4   :  { %19 = vsyncpa [#allocation6], 0 }
   0x5   :  { %20 = vsyncpa [#allocation4], 0 }
   0x6   :  { %22 = vsyncpa [#allocation4 + $0x1], 0  ;;  %s3246_s25 = smov 0   ;;  %s3248_s26 = smov 0  }
   0x7   :  { %s3250_s27 = smov 0   ;;  %s3252_s28 = smov 0  }
   0x8 LB: > { %3685 = sst [smem:[#allocation12_spill]] %s3147_s25  ;;  %s3267_s29 = sadd.s32 4294967295, %s3159_s28   ;;  %s3159_s28 = sphi %s3252_s28, %s3710_s28   ;;  %s3155_s27 = sphi %s3250_s27, %s3712_s27   ;;  %s3151_s26 = sphi %s3248_s26, %s3714_s26   ;;  %s3147_s25 = sphi %s3246_s25, %s3713_s25  }
   0x9   : > { %3686 = sst [smem:[#allocation13_spill]] %s3155_s27  ;;  %s2422_s30 = sadd.s32 4294967294, %s3159_s28  }
   0xa   : > { %3687 = sst [smem:[#allocation14_spill]] %s3159_s28  ;;  %s3271_s14 = sadd.s32 1, %s3159_s28  }
   0xb   : > { %3688 = sst [smem:[#allocation15_spill]] %s3271_s14  ;;  %s313_s15 = sadd.s32 1, %s3155_s27 }
   0xc   : > { %s310_s16 = ssub.s32 %s3159_s28, %s3271_s14  ;;  %p323_p0 = scmp.ne.s32.totalorder %s3155_s27, %s3151_s26 }
   0xd   : > { %p311_p1 = scmp.eq.s32.totalorder %s310_s16, 0  ;;  %p324_p2 = scmp.eq.s32.totalorder %s3267_s29, 1 }
   0xe   : > { %p329_p3 = scmp.ne.s32.totalorder %s3151_s26, %s3147_s25  ;;  %p330_p4 = scmp.eq.s32.totalorder %s2422_s30, 1 }
   0xf   : > { %s3282_s17 = scalar_select %p311_p1, %s3155_s27, %s313_s15  }
  0x10   : > { %p3284_p5 = por %p324_p2, %p323_p0  ;;  %p3288_p6 = por %p330_p4, %p329_p3 }
  0x11   : > { %3689 = sst [smem:[#allocation16_spill]] %s3282_s17  ;;  %p2423_p7 = scmp.ge.s32.totalorder %s3159_s28, 1 }
  0x12   : > { %s3690_s18 = scalar_select %p3284_p5, 1, 0 }
  0x13   : > { %s3692_s19 = scalar_select %p3288_p6, 1, 0 }
  0x14   : > { %3691 = sst [smem:[#allocation17_spill]] %s3690_s18  ;;  %p337_p8 = scmp.lt.s32.totalorder %s3159_s28, 3 }
  0x15   : > { %3693 = sst [smem:[#allocation18_spill]] %s3692_s19  ;;  %p3675_p9 = scmp.eq.s32.totalorder %s3267_s29, 0 }
  0x16   : > { %p3295_p10 = pnand %p2423_p7, %p337_p8  ;;  %s3161_s21 = smov [#allocation5]  }
  0x17   : > { %s377_s22 = sshll.u32 %s3161_s21, 4  ;;  %s3162_s24 = smov [#allocation2]   ;;  %s378_s22 = int_to_ptr.vmem [resolvable:$true] %s377_s22 }
  0x18   : > { %s3694_s20 = scalar_select %p3295_p10, 1, 0 }
  0x19   : > { %p2683_p11 = pneg %p3295_p10  ;;  %s361_s30 = sshll.u32 %s3162_s24, 4  ;;  %s3307_s30 = int_to_ptr.vmem [resolvable:$true] %s361_s30 }
  0x1a   : > { %s3696_s7 = sld [smem:[#allocation19_spill]] }
  0x1b   : > { %p3303_p12 = pnand %p3675_p9, %p2683_p11 }
  0x1d   : > { %p3317_p0 = pneg %p3303_p12 }
  0x20   : > { %s3005_s17 = scalar_lea.hbm %s3696_s7, 8192 }
  0x21   : > { %p3006_p13 = scmp.ne.s32.totalorder %s3696_s7, %s3005_s17  ;;  %p3012_p3 = scmp.lt.u32.totalorder %s3005_s17, %s3696_s7 }
  0x23   : > { %p3008_p1 = pnand %p3317_p0, %p3006_p13 }
  0x25   : > { %p3009_p2 = pneg %p3008_p1 }
  0x27   : > { %p3014_p4 = pnand %p3012_p3, %p3009_p2 }
  0x29   : > { %3017 = shalt.err (!%p3014_p4)
}
  0x2a   : > { %s3018_s15 = scalar_lea.vmem %s378_s22, 8192  ;;  %p3026_p9 = scmp.lt.s32.totalorder %s378_s22, %s378_s22 }
  0x2b   : > { %p3019_p7 = scmp.ne.s32.totalorder %s378_s22, %s3018_s15  ;;  %p3027_p6 = scmp.lt.s32.totalorder %s3018_s15, %s3018_s15 }
  0x2d   : > { %p3021_p8 = pnand %p3019_p7, %p3317_p0  ;;  %p3028_p5 = por %p3027_p6, %p3026_p9 }
  0x2f   : > { %p3022_p11 = pneg %p3021_p8 }
  0x31   : > { %p3029_p10 = pnand %p3028_p5, %p3022_p11 }
  0x33   : > { %3032 = shalt.err (!%p3029_p10)
}
  0x34   : > { %s3163_s27 = smov 128   ;;  %s3164_s14 = smov 8  }
  0x35   : > { %2689 = dma.hbm_to_vmem [thread:$0]  (!%p3303_p12), %s3696_s7, 8192, %s378_s22, [#allocation6], %s3163_s27, %s3163_s27, %s3164_s14  }
  0x36   : > { %s3033_s25 = scalar_lea.hbm %s3662_s5, 8192 }
  0x37   : > { %p3034_p13 = scmp.ne.s32.totalorder %s3662_s5, %s3033_s25  ;;  %p3040_p9 = scmp.lt.u32.totalorder %s3033_s25, %s3662_s5 }
  0x39   : > { %p3036_p5 = pnand %p3034_p13, %p3317_p0 }
  0x3b   : > { %p3037_p6 = pneg %p3036_p5 }
  0x3d   : > { %p3042_p10 = pnand %p3040_p9, %p3037_p6 }
  0x3f   : > { %3045 = shalt.err (!%p3042_p10)
}
  0x40   : > { %s3046_s22 = scalar_lea.vmem %s3307_s30, 8192  ;;  %p3054_p4 = scmp.lt.s32.totalorder %s3307_s30, %s3307_s30 }
  0x41   : > { %p3047_p1 = scmp.ne.s32.totalorder %s3307_s30, %s3046_s22  ;;  %p3055_p7 = scmp.lt.s32.totalorder %s3046_s22, %s3046_s22 }
  0x43   : > { %p3049_p2 = pnand %p3047_p1, %p3317_p0  ;;  %p3056_p8 = por %p3055_p7, %p3054_p4 }
  0x45   : > { %p3050_p3 = pneg %p3049_p2 }
  0x47   : > { %p3057_p11 = pnand %p3056_p8, %p3050_p3 }
  0x49   : > { %3060 = shalt.err (!%p3057_p11)
}
  0x4a   : > { %s3165_s13 = smov 256   ;;  %s3166_s25 = smov 16  }
  0x4b   : > { %2686 = dma.hbm_to_vmem [thread:$0]  (!%p3303_p12), %s3662_s5, 8192, %s3307_s30, [#allocation3], %s3165_s13, %s3165_s13, %s3166_s25  }
  0x4c   : > { %s3167_s27 = smov [#allocation7]   ;;  %s3061_s16 = scalar_lea.hbm %s3666_s9, 2048 }
  0x4d   : > { %s393_s14 = sshll.u32 %s3167_s27, 4  ;;  %p3062_p13 = scmp.ne.s32.totalorder %s3666_s9, %s3061_s16  ;;  %s394_s14 = int_to_ptr.vmem [resolvable:$true] %s393_s14 }
  0x4e   : > { %p3068_p9 = scmp.lt.u32.totalorder %s3061_s16, %s3666_s9 }
  0x4f   : > { %p3064_p5 = pnand %p3062_p13, %p3317_p0 }
  0x51   : > { %p3065_p6 = pneg %p3064_p5 }
  0x53   : > { %p3070_p10 = pnand %p3068_p9, %p3065_p6 }
  0x55   : > { %3073 = shalt.err (!%p3070_p10)
}
  0x56   : > { %s3074_s30 = scalar_lea.vmem %s394_s14, 2048  ;;  %p3082_p4 = scmp.lt.s32.totalorder %s394_s14, %s394_s14 }
  0x57   : > { %p3075_p1 = scmp.ne.s32.totalorder %s394_s14, %s3074_s30  ;;  %p3083_p7 = scmp.lt.s32.totalorder %s3074_s30, %s3074_s30 }
  0x59   : > { %p3077_p2 = pnand %p3075_p1, %p3317_p0  ;;  %p3084_p8 = por %p3083_p7, %p3082_p4 }
  0x5b   : > { %p3078_p3 = pneg %p3077_p2 }
  0x5d   : > { %p3085_p11 = pnand %p3084_p8, %p3078_p3 }
  0x5f   : > { %3088 = shalt.err (!%p3085_p11)
}
  0x60   : > { %s3168_s13 = smov 64   ;;  %s3169_s25 = smov 4  }
  0x61   : > { %2692 = dma.hbm_to_vmem [thread:$0]  (!%p3303_p12), %s3666_s9, 2048, %s394_s14, [#allocation6], %s3168_s13, %s3168_s13, %s3169_s25  }
  0x62   : > { %p3698_p13 = scmp.ne.s32.totalorder %s3694_s20, 0 }
  0x63   : > { %p3699_p5 = scmp.eq.s32.totalorder (!%p3698_p13), %s3267_s29, 0 }
  0x64   : > { %428 = sbr.rel (%p3698_p13) target bundleno = 1515 (0x5eb), region = 72 }
  0x6b   : > { %3134 = dma.done.wait (%p3699_p5), [#allocation3], 8192   ;;  %p3700_p0 = pmov %p3699_p5 }
  0x6d   : > { %3136 = vsyncadd (%p3700_p0), [#allocation3], 4294959104  ;;  %p3701_p6 = pmov %p3700_p0 }
  0x6e   : > { %p3702_p9 = pmov %p3700_p0 }
  0x6f   : > { %3138 = dma.done.wait (%p3701_p6), [#allocation6], 10240  }
  0x70   : > { %3140 = vsyncadd (%p3702_p9), [#allocation6], 4294957056  ;;  %s2433_s23 = sshll.u32 %s3267_s29, 1  ;;  %v3170_v0 = vmov 1   ;;  %v3171_v1 = vmov 0   ;;  %v3172_v10 = vmov 2   ;;  %v538_v51 = vlaneseq }
  0x71   : > { %2751 = vset.pattern.permute.xlu1 %v3170_v0  ;;  %2750 = vset.pattern.permute.xlu0 %v3171_v1  ;;  %p482_p12 = scmp.lt.s32.totalorder %s2433_s23, 3  ;;  %v2765_v4 = vld [vmem:[%s3660_s3 + $0x4] ss:$8 sps:$4 sm:$0xff]   ;;  %v2767_v5 = vld [vmem:[%s3660_s3] ss:$8 sps:$4 sm:$0xff]   ;;  %vm1610_vm0 = vcmask 1041409  }
  0x72   : > { %821 = vmatprep.mubr.bf16.mxu0 %v3171_v1  ;;  %v2768_v6 = vld [vmem:[%s3660_s3 + $0x14] ss:$8 sps:$4 sm:$0xff]   ;;  %789 = vmatprep.subr.bf16.mxu0 %v2765_v4  ;;  %v2770_v8 = vld [vmem:[%s3660_s3 + $0x10] ss:$8 sps:$4 sm:$0xff]   ;;  %v2771_v9 = vld [vmem:[%s3660_s3 + $0x24] ss:$8 sps:$4 sm:$0xff]  }
  0x73   : > { %s3716_s23 = smov (!%p482_p12, %s2433_s23), 3  ;;  %790 = vmatpush1.bf16.msra.mxu0 %v2767_v5  ;;  %v2773_v12 = vld [vmem:[%s3660_s3 + $0x20] ss:$8 sps:$4 sm:$0xff]   ;;  %v2774_v13 = vld [vmem:[%s3660_s3 + $0x34] ss:$8 sps:$4 sm:$0xff]   ;;  %v3456_v54 = vshrl.u32 %v538_v51, 7 }
  0x74   : > { %s2611_s20 = sshll.u32 %s3716_s23, 5  ;;  %791 = vmatprep.subr.bf16.mxu0 %v2768_v6  ;;  %v2776_v14 = vld [vmem:[%s3660_s3 + $0x30] ss:$8 sps:$4 sm:$0xff]   ;;  %v2777_v15 = vld [vmem:[%s3660_s3 + $0x44] ss:$8 sps:$4 sm:$0xff]   ;;  %vm3174_vm1 = vmmov 0  }
  0x75   : > { %s3391_s27 = scalar_lea.vmem %s3657_s0, %s2611_s20  ;;  %v2779_v16 = vld [vmem:[%s3660_s3 + $0x40] ss:$8 sps:$4 sm:$0xff]   ;;  %v2780_v18 = vld [vmem:[%s3660_s3 + $0x54] ss:$8 sps:$4 sm:$0xff]   ;;  %v2782_v19 = vld [vmem:[%s3660_s3 + $0x50] ss:$8 sps:$4 sm:$0xff]  }
  0x76   : > { %v489_v2 = vld [vmem:[%s3391_s27] sm:$0xff]  ;;  %v490_v3 = vld [vmem:[%s3391_s27 + $0x8] sm:$0xff]  ;;  %v492_v7 = vld [vmem:[%s3391_s27 + $0x18] sm:$0xff]  ;;  %v3459_v57 = vsub.s32 1, %v3456_v54  ;;  %v3462_v59 = vsub.s32 0, %v3456_v54  ;;  %v636_v62 = vsub.s32 2, %v3456_v54 }
  0x77   : > { %551 = vperm.xlu1 %2751, %v489_v2   ;;  %500 = vperm.xlu0 %2750, %v489_v2   ;;  %v491_v11 = vld [vmem:[%s3391_s27 + $0x10] sm:$0xff]  ;;  %v493_v17 = vld [vmem:[%s3391_s27 + $0x20] sm:$0xff]  ;;  %v494_v20 = vld [vmem:[%s3391_s27 + $0x28] sm:$0xff]  ;;  %s478_s28 = sand.u32 1, %s3151_s26   ;;  %s3703_s21 = sld [smem:[#allocation17_spill]]  ;;  %vm2316_vm2 = vcmask 41984  }
  0x78   : > { %792 = vmatpush1.bf16.msra.mxu0 %v2770_v8  ;;  %v2783_v21 = vld [vmem:[%s3660_s3 + $0x64] ss:$8 sps:$4 sm:$0xff]   ;;  %v2785_v22 = vld [vmem:[%s3660_s3 + $0x60] ss:$8 sps:$4 sm:$0xff]   ;;  %v496_v23 = vld [vmem:[%s3391_s27 + $0x38] sm:$0xff]  ;;  %s2432_s7 = sshll.u32 %s478_s28, 1 }
  0x79   : > { %793 = vmatprep.subr.bf16.mxu0 %v2771_v9  ;;  %v2786_v24 = vld [vmem:[%s3660_s3 + $0x74] ss:$8 sps:$4 sm:$0xff]   ;;  %v2788_v25 = vld [vmem:[%s3660_s3 + $0x70] ss:$8 sps:$4 sm:$0xff]   ;;  %v497_v61 = vld [vmem:[%s3658_s1] sm:$0x7] }
  0x7a   : > { %v495_v26 = vld [vmem:[%s3391_s27 + $0x30] sm:$0xff]  ;;  %v2793_v28 = vld [vmem:[#allocation2 + $0xc] ss:$16 sps:$4 sm:$0xff]   ;;  %v3469_v63 = vrot.slane %v497_v61, %v3459_v57  ;;  %v3478_v6 = vrot.slane %v497_v61, %v636_v62  ;;  %s2608_s18 = sshll.u32 %s3267_s29, 5  ;;  %s480_s27 = scalar_lea.vmem [#allocation8], %s2432_s7 }
  0x7b   : > { %555 = vperm.xlu1 %2751, %v490_v3   ;;  %505 = vperm.xlu0 %2750, %v490_v3   ;;  %v2789_v27 = vld [vmem:[#allocation2 + $0x4] ss:$16 sps:$4 sm:$0xff]   ;;  %v2794_v29 = vld [vmem:[#allocation2] ss:$16 sps:$4 sm:$0xff]   ;;  %s2332_s14 = sshll.u32 %s480_s27, 4  ;;  %s3704_s16 = sld [smem:[#allocation20_spill]]  ;;  %s3617_s14 = int_to_ptr.vmem [resolvable:$true] %s2332_s14 }
  0x7c   : > { %794 = vmatpush1.bf16.msra.mxu0 %v2773_v12  ;;  %v2795_v30 = vld [vmem:[#allocation2 + $0x24] ss:$16 sps:$4 sm:$0xff]   ;;  %1292 = vmatprep.subr.bf16.mxu1 %v2789_v27  ;;  %v2800_v31 = vld [vmem:[#allocation2 + $0x20] ss:$16 sps:$4 sm:$0xff]   ;;  %s2319_s29 = scalar_lea.sflag [#allocation4], %s478_s28  ;;  %s3089_s15 = scalar_lea.vmem %s3617_s14, 32 }
  0x7d   : > { %795 = vmatprep.subr.bf16.mxu0 %v2774_v13  ;;  %1293 = vmatpush1.bf16.msra.mxu1 %v2794_v29  ;;  %v2801_v32 = vld [vmem:[#allocation2 + $0x44] ss:$16 sps:$4 sm:$0xff]   ;;  %v2806_v33 = vld [vmem:[#allocation2 + $0x40] ss:$16 sps:$4 sm:$0xff]   ;;  %p3090_p10 = scmp.ne.s32.totalorder %s3617_s14, %s3089_s15  ;;  %p3705_p1 = scmp.ne.s32.totalorder %s3703_s21, 0 }
  0x7e   : > { %1294 = vmatprep.subr.bf16.mxu1 %v2795_v30  ;;  %v2807_v34 = vld [vmem:[#allocation2 + $0x64] ss:$16 sps:$4 sm:$0xff]   ;;  %v2812_v35 = vld [vmem:[#allocation2 + $0x60] ss:$16 sps:$4 sm:$0xff]   ;;  %v2799_v30 = vld [vmem:[#allocation2 + $0x2c] ss:$16 sps:$4 sm:$0xff]  }
  0x7f   : > { %2752 = vset.pattern.permute.xlu1 %v3172_v10  ;;  %515 = vperm.xlu0 %2750, %v492_v7   ;;  %v2813_v36 = vld [vmem:[#allocation2 + $0x84] ss:$16 sps:$4 sm:$0xff]   ;;  %v2818_v37 = vld [vmem:[#allocation2 + $0x80] ss:$16 sps:$4 sm:$0xff]   ;;  %p3091_p2 = pnand %p3090_p10, %p3705_p1  ;;  %s3175_s22 = smov [#allocation8]  }
  0x80   : > { %607 = vperm.xlu1 %2752, %v490_v3   ;;  %796 = vmatpush1.bf16.msra.mxu0 %v2776_v14  ;;  %v2819_v38 = vld [vmem:[#allocation2 + $0xa4] ss:$16 sps:$4 sm:$0xff]   ;;  %v2824_v39 = vld [vmem:[#allocation2 + $0xa0] ss:$16 sps:$4 sm:$0xff]   ;;  %s3093_s30 = sshll.u32 %s3175_s22, 4  ;;  %s3094_s30 = int_to_ptr.vmem [resolvable:$false] %s3093_s30 }
  0x81   : > { %797 = vmatprep.subr.bf16.mxu0 %v2777_v15  ;;  %1295 = vmatpush1.bf16.msra.mxu1 %v2800_v31  ;;  %v2825_v40 = vld [vmem:[#allocation2 + $0xc4] ss:$16 sps:$4 sm:$0xff]   ;;  %v2830_v41 = vld [vmem:[#allocation2 + $0xc0] ss:$16 sps:$4 sm:$0xff]   ;;  %s3615_s24 = scalar_lea.hbm %s3704_s16, %s2608_s18  ;;  %p3092_p3 = pneg %p3091_p2 }
  0x82   : > { %1296 = vmatprep.subr.bf16.mxu1 %v2801_v32  ;;  %v2831_v42 = vld [vmem:[#allocation2 + $0xe4] ss:$16 sps:$4 sm:$0xff]   ;;  %v2836_v43 = vld [vmem:[#allocation2 + $0xe0] ss:$16 sps:$4 sm:$0xff]   ;;  %s3095_s13 = scalar_lea.vmem %s3094_s30, 64  ;;  %p3096_p4 = scmp.lt.s32.totalorder %s3617_s14, %s3094_s30 }
  0x83   : > { %2754 = vset.pattern.permute.xlu0 %v3172_v10  ;;  %v2837_v44 = vld [vmem:[#allocation2 + $0x104] ss:$16 sps:$4 sm:$0xff]   ;;  %v2842_v45 = vld [vmem:[#allocation2 + $0x100] ss:$16 sps:$4 sm:$0xff]   ;;  %p3097_p7 = scmp.lt.s32.totalorder %s3095_s13, %s3089_s15 }
  0x84   : > { %2753 = vset.pattern.permute.xlu1 %v3171_v1  ;;  %603 = vperm.xlu0 %2754, %v489_v2   ;;  %v2843_v46 = vld [vmem:[#allocation2 + $0x124] ss:$16 sps:$4 sm:$0xff]   ;;  %v2848_v47 = vld [vmem:[#allocation2 + $0x120] ss:$16 sps:$4 sm:$0xff]  }
  0x85   : > { %510 = vperm.xlu1 %2753, %v491_v11   ;;  %798 = vmatpush1.bf16.msra.mxu0 %v2779_v16  ;;  %v2849_v48 = vld [vmem:[#allocation2 + $0x144] ss:$16 sps:$4 sm:$0xff]   ;;  %v2854_v49 = vld [vmem:[#allocation2 + $0x140] ss:$16 sps:$4 sm:$0xff]   ;;  %p3098_p8 = por %p3097_p7, %p3096_p4 }
  0x86   : > { %799 = vmatprep.subr.bf16.mxu0 %v2780_v18  ;;  %1297 = vmatpush1.bf16.msra.mxu1 %v2806_v33  ;;  %v2855_v50 = vld [vmem:[#allocation2 + $0x164] ss:$16 sps:$4 sm:$0xff]   ;;  %v2860_v52 = vld [vmem:[#allocation2 + $0x160] ss:$16 sps:$4 sm:$0xff]  }
  0x87   : > { %1298 = vmatprep.subr.bf16.mxu1 %v2807_v34  ;;  %v2861_v53 = vld [vmem:[#allocation2 + $0x184] ss:$16 sps:$4 sm:$0xff]   ;;  %v2866_v55 = vld [vmem:[#allocation2 + $0x180] ss:$16 sps:$4 sm:$0xff]   ;;  %p3099_p11 = pnand %p3098_p8, %p3092_p3 }
  0x88   : > { %611 = vperm.xlu0 %2754, %v491_v11   ;;  %v2867_v56 = vld [vmem:[#allocation2 + $0x1a4] ss:$16 sps:$4 sm:$0xff]   ;;  %v3486_v14 = vld [vmem:[%s3659_s2] ss:$0 sm:$0xff] }
  0x89   : > { %2755 = vset.pattern.permute.xlu1 %v3170_v0  ;;  %800 = vmatpush1.bf16.msra.mxu0 %v2782_v19 }
  0x8a   : > { %559 = vperm.xlu1 %2755, %v491_v11   ;;  %801 = vmatprep.subr.bf16.mxu0 %v2783_v21 }
  0x8b   : > { %1299 = vmatpush1.bf16.msra.mxu1 %v2812_v35 }
  0x8c   : > { %619 = vperm.xlu0 %2754, %v493_v17   ;;  %1300 = vmatprep.subr.bf16.mxu1 %v2813_v36  ;;  %v2797_v36 = vld [vmem:[#allocation2 + $0x28] ss:$16 sps:$4 sm:$0xff]  }
  0x8d   : > { %802 = vmatpush1.bf16.msra.mxu0 %v2785_v22 }
  0x8e   : > { %563 = vperm.xlu1 %2755, %v492_v7   ;;  %803 = vmatprep.subr.bf16.mxu0 %v2786_v24 }
  0x8f   : > { %1301 = vmatpush1.bf16.msra.mxu1 %v2818_v37  ;;  %v2805_v37 = vld [vmem:[#allocation2 + $0x4c] ss:$16 sps:$4 sm:$0xff]  }
  0x90   : > { %2759 = vset.pattern.permute.xlu0 %v3171_v1  ;;  %1302 = vmatprep.subr.bf16.mxu1 %v2819_v38 }
  0x91   : > { %525 = vperm.xlu0 %2759, %v494_v20   ;;  %804 = vmatpush1.bf16.msra.mxu0 %v2788_v25 }
  0x92   : > { %2756 = vset.pattern.permute.xlu1 %v3172_v10  ;;  %1365 = vmatprep.subr.bf16.mxu0 %v2793_v28  ;;  %v2791_v28 = vld [vmem:[#allocation2 + $0x8] ss:$16 sps:$4 sm:$0xff]  }
  0x93   : > { %615 = vperm.xlu1 %2756, %v492_v7   ;;  %1303 = vmatpush1.bf16.msra.mxu1 %v2824_v39 }
  0x94   : > { %1304 = vmatprep.subr.bf16.mxu1 %v2825_v40 }
  0x95   : > { %535 = vperm.xlu0 %2759, %v496_v23  }
  0x97   : > { %2757 = vset.pattern.permute.xlu1 %v3171_v1  ;;  %1305 = vmatpush1.bf16.msra.mxu1 %v2830_v41 }
  0x98   : > { %520 = vperm.xlu1 %2757, %v493_v17   ;;  %1306 = vmatprep.subr.bf16.mxu1 %v2831_v42  ;;  %v2803_v42 = vld [vmem:[#allocation2 + $0x48] ss:$16 sps:$4 sm:$0xff]  }
  0x99   : > { %2763 = vset.pattern.permute.xlu0 %v3172_v10 }
  0x9a   : > { %627 = vperm.xlu0 %2763, %v495_v26  }
  0x9b   : > { %1307 = vmatpush1.bf16.msra.mxu1 %v2836_v43  ;;  %v2811_v43 = vld [vmem:[#allocation2 + $0x6c] ss:$16 sps:$4 sm:$0xff]  }
  0x9c   : > { %2758 = vset.pattern.permute.xlu1 %v3170_v0  ;;  %1308 = vmatprep.subr.bf16.mxu1 %v2837_v44 }
  0x9d   : > { %567 = vperm.xlu1 %2758, %v493_v17  }
  0x9f   : > { %1309 = vmatpush1.bf16.msra.mxu1 %v2842_v45 }
  0xa0   : > { %1310 = vmatprep.subr.bf16.mxu1 %v2843_v46 }
  0xa1   : > { %571 = vperm.xlu1 %2758, %v494_v20  }
  0xa3   : > { %1311 = vmatpush1.bf16.msra.mxu1 %v2848_v47 }
  0xa4   : > { %1312 = vmatprep.subr.bf16.mxu1 %v2849_v48  ;;  %v2809_v48 = vld [vmem:[#allocation2 + $0x68] ss:$16 sps:$4 sm:$0xff]  }
  0xa5   : > { %2760 = vset.pattern.permute.xlu1 %v3172_v10 }
  0xa6   : > { %623 = vperm.xlu1 %2760, %v494_v20  }
  0xa7   : > { %1313 = vmatpush1.bf16.msra.mxu1 %v2854_v49  ;;  %v2817_v49 = vld [vmem:[#allocation2 + $0x8c] ss:$16 sps:$4 sm:$0xff]  }
  0xa8   : > { %1314 = vmatprep.subr.bf16.mxu1 %v2855_v50 }
  0xaa   : > { %2761 = vset.pattern.permute.xlu1 %v3171_v1 }
  0xab   : > { %530 = vperm.xlu1 %2761, %v495_v26   ;;  %1315 = vmatpush1.bf16.msra.mxu1 %v2860_v52 }
  0xac   : > { %1316 = vmatprep.subr.bf16.mxu1 %v2861_v53 }
  0xaf   : > { %2762 = vset.pattern.permute.xlu1 %v3170_v0  ;;  %1317 = vmatpush1.bf16.msra.mxu1 %v2866_v55  ;;  %v3472_v0 = vrot.slane %v497_v61, %v3462_v59  ;;  %v2815_v55 = vld [vmem:[#allocation2 + $0x88] ss:$16 sps:$4 sm:$0xff]  }
  0xb0   : > { %575 = vperm.xlu1 %2762, %v495_v26   ;;  %1318 = vmatprep.subr.bf16.mxu1 %v2867_v56 }
  0xb4   : > { %579 = vperm.xlu1 %2762, %v496_v23  }
  0xb8   : > { %2764 = vset.pattern.permute.xlu1 %v3172_v10 }
  0xb9   : > { %631 = vperm.xlu1 %2764, %v496_v23  }
  0xf6   : > { %v552_v58 = vpop.permute.xlu1 %551  ;;  %v501_v60 = vpop.permute.xlu0 %500 }
  0xf7   : > { %v586_v9 = vmul.f32 %v3469_v63, %v552_v58  ;;  %v542_v10 = vmul.f32 %v3472_v0, %v501_v60  ;;  %v2823_v58 = vld [vmem:[#allocation2 + $0xac] ss:$16 sps:$4 sm:$0xff]  }
  0xf9   : > { %v594_v16 = vadd.f32 %v586_v9, %v542_v10 }
  0xfa   : > { %v556_v2 = vpop.permute.xlu1 %555  ;;  %v506_v3 = vpop.permute.xlu0 %505 }
  0xfb   : > { %v587_v4 = vmul.f32 %v3469_v63, %v556_v2  ;;  %v543_v5 = vmul.f32 %v3472_v0, %v506_v3  ;;  %v2821_v3 = vld [vmem:[#allocation2 + $0xa8] ss:$16 sps:$4 sm:$0xff]  }
  0xfd   : > { %v595_v11 = vadd.f32 %v587_v4, %v543_v5 }
  0xfe   : > { %v516_v7 = vpop.permute.xlu0 %515 }
  0xff   : > { %v608_v8 = vpop.permute.xlu1 %607  ;;  %v545_v34 = vmul.f32 %v3472_v0, %v516_v7 }
 0x100   : > { %v639_v12 = vmul.f32 %v3478_v6, %v608_v8  ;;  %v2829_v8 = vld [vmem:[#allocation2 + $0xcc] ss:$16 sps:$4 sm:$0xff]  }
 0x102   : > { %v647_v13 = vadd.f32 %v639_v12, %v595_v11  ;;  %v2827_v11 = vld [vmem:[#allocation2 + $0xc8] ss:$16 sps:$4 sm:$0xff]  }
 0x103   : > { %v604_v15 = vpop.permute.xlu0 %603 }
 0x104   : > { %v638_v17 = vmul.f32 %v3478_v6, %v604_v15  ;;  %v511_v18 = vpop.permute.xlu1 %510  ;;  %v662_v19 = vadd.f32 %v3486_v14, %v647_v13  ;;  %v2835_v13 = vld [vmem:[#allocation2 + $0xec] ss:$16 sps:$4 sm:$0xff]  }
 0x105   : > { %v544_v27 = vmul.f32 %v3472_v0, %v511_v18  ;;  %v2833_v18 = vld [vmem:[#allocation2 + $0xe8] ss:$16 sps:$4 sm:$0xff]  }
 0x106   : > { %v646_v20 = vadd.f32 %v638_v17, %v594_v16  ;;  %v670_v23 = vmax.f32 %v662_v19, 0.0 }
 0x107   : > { %v612_v26 = vpop.permute.xlu0 %611 }
 0x108   : > { %v661_v21 = vadd.f32 %v3486_v14, %v646_v20  ;;  %v640_v32 = vmul.f32 %v3478_v6, %v612_v26 }
 0x109   : > { %v560_v22 = vpop.permute.xlu1 %559 }
 0x10a   : > { %v669_v24 = vmax.f32 %v661_v21, 0.0  ;;  %v588_v25 = vmul.f32 %v3469_v63, %v560_v22  ;;  %v2841_v21 = vld [vmem:[#allocation2 + $0x10c] ss:$16 sps:$4 sm:$0xff]  }
 0x10b   : > { %v620_v52 = vpop.permute.xlu0 %619 }
 0x10c   : > { %v677_v29 = vpack.c.bf16 %v670_v23, %v669_v24  ;;  %v596_v31 = vadd.f32 %v588_v25, %v544_v27  ;;  %v642_v5 = vmul.f32 %v3478_v6, %v620_v52  ;;  %v2839_v25 = vld [vmem:[#allocation2 + $0x108] ss:$16 sps:$4 sm:$0xff]  }
 0x10d   : > { %v564_v33 = vpop.permute.xlu1 %563 }
 0x10e   : > { %822 = vmatmul.mubr.bf16.vlgmr.msra.gmra.mrb[0].mxu0 %v677_v29  ;;  %v589_v35 = vmul.f32 %v3469_v63, %v564_v33  ;;  %v648_v38 = vadd.f32 %v640_v32, %v596_v31  ;;  %v2845_v31 = vld [vmem:[#allocation2 + $0x128] ss:$16 sps:$4 sm:$0xff]  }
 0x10f   : > { %831 = vmatprep.mubr.bf16.mxu0 %v3171_v1  ;;  %1366 = vmatpush1.bf16.msra.mxu0 %v2791_v28  ;;  %v2847_v28 = vld [vmem:[#allocation2 + $0x12c] ss:$16 sps:$4 sm:$0xff]  }
 0x110   : > { %1367 = vmatprep.subr.bf16.mxu0 %v2799_v30  ;;  %v597_v40 = vadd.f32 %v589_v35, %v545_v34  ;;  %v663_v44 = vadd.f32 %v3486_v14, %v648_v38  ;;  %v526_v2 = vpop.permute.xlu0 %525  ;;  %v2853_v34 = vld [vmem:[#allocation2 + $0x14c] ss:$16 sps:$4 sm:$0xff]  }
 0x111   : > { %v547_v10 = vmul.f32 %v3472_v0, %v526_v2  ;;  %v2879_v2 = vld [vmem:[#allocation2 + $0x1e4] ss:$16 sps:$4 sm:$0xff]  }
 0x112   : > { %v616_v39 = vpop.permute.xlu1 %615  ;;  %v671_v50 = vmax.f32 %v663_v44, 0.0  ;;  %v2857_v44 = vld [vmem:[#allocation2 + $0x168] ss:$16 sps:$4 sm:$0xff]  }
 0x113   : > { %v641_v41 = vmul.f32 %v3478_v6, %v616_v39  ;;  %1368 = vmatpush1.bf16.msra.mxu0 %v2797_v36  ;;  %v2851_v39 = vld [vmem:[#allocation2 + $0x148] ss:$16 sps:$4 sm:$0xff]  }
 0x114   : > { %1369 = vmatprep.subr.bf16.mxu0 %v2805_v37  ;;  %v536_v24 = vpop.permute.xlu0 %535 }
 0x115   : > { %v649_v45 = vadd.f32 %v641_v41, %v597_v40  ;;  %v2859_v40 = vld [vmem:[#allocation2 + $0x16c] ss:$16 sps:$4 sm:$0xff]  }
 0x117   : > { %v664_v46 = vadd.f32 %v3486_v14, %v649_v45  ;;  %v521_v47 = vpop.permute.xlu1 %520  ;;  %1370 = vmatpush1.bf16.msra.mxu0 %v2803_v42  ;;  %v549_v42 = vmul.f32 %v3472_v0, %v536_v24 }
 0x118   : > { %1371 = vmatprep.subr.bf16.mxu0 %v2811_v43  ;;  %v546_v61 = vmul.f32 %v3472_v0, %v521_v47 }
 0x119   : > { %v672_v51 = vmax.f32 %v664_v46, 0.0  ;;  %v628_v33 = vpop.permute.xlu0 %627  ;;  %v2865_v46 = vld [vmem:[#allocation2 + $0x18c] ss:$16 sps:$4 sm:$0xff]  }
 0x11a   : > { %v644_v37 = vmul.f32 %v3478_v6, %v628_v33 }
 0x11b   : > { %v678_v53 = vpack.c.bf16 %v672_v51, %v671_v50  ;;  %1372 = vmatpush1.bf16.msra.mxu0 %v2809_v48  ;;  %v2863_v50 = vld [vmem:[#allocation2 + $0x188] ss:$16 sps:$4 sm:$0xff]   ;;  %v2871_v51 = vld [vmem:[#allocation2 + $0x1ac] ss:$16 sps:$4 sm:$0xff]  }
 0x11c   : > { %v568_v56 = vpop.permute.xlu1 %567  ;;  %1373 = vmatprep.subr.bf16.mxu0 %v2817_v49 }
 0x11d   : > { %v590_v60 = vmul.f32 %v3469_v63, %v568_v56  ;;  %832 = vmatmul.mubr.bf16.gmra.mrb[4].mxu0 %v678_v53  ;;  %v2869_v53 = vld [vmem:[#allocation2 + $0x1a8] ss:$16 sps:$4 sm:$0xff]   ;;  %v2872_v56 = vld [vmem:[#allocation2 + $0x1a0] ss:$16 sps:$4 sm:$0xff]  }
 0x11e   : > { %841 = vmatprep.mubr.bf16.mxu0 %v3171_v1  ;;  %1319 = vmatpush1.bf16.msra.mxu1 %v2872_v56 }
 0x11f   : > { %1374 = vmatpush1.bf16.msra.mxu0 %v2815_v55  ;;  %v598_v4 = vadd.f32 %v590_v60, %v546_v61  ;;  %v2875_v60 = vld [vmem:[#allocation2 + $0x1c8] ss:$16 sps:$4 sm:$0xff]   ;;  %v2878_v61 = vld [vmem:[#allocation2 + $0x1c0] ss:$16 sps:$4 sm:$0xff]  }
 0x120   : > { %v572_v7 = vpop.permute.xlu1 %571  ;;  %1375 = vmatprep.subr.bf16.mxu0 %v2823_v58  ;;  %v2877_v58 = vld [vmem:[#allocation2 + $0x1cc] ss:$16 sps:$4 sm:$0xff]  }
 0x121   : > { %v591_v9 = vmul.f32 %v3469_v63, %v572_v7  ;;  %v650_v12 = vadd.f32 %v642_v5, %v598_v4  ;;  %v2884_v4 = vld [vmem:[#allocation2 + $0x1e0] ss:$16 sps:$4 sm:$0xff]  }
 0x122   : > { %v697_v5 = vld [vmem:[%s3661_s4] sm:$0x3] }
 0x123   : > { %1376 = vmatpush1.bf16.msra.mxu0 %v2821_v3  ;;  %v599_v16 = vadd.f32 %v591_v9, %v547_v10  ;;  %v665_v19 = vadd.f32 %v3486_v14, %v650_v12  ;;  %v2881_v3 = vld [vmem:[#allocation2 + $0x1e8] ss:$16 sps:$4 sm:$0xff]   ;;  %v702_v7 = vrot.slane %v697_v5, %v3462_v59 }
 0x124   : > { %1377 = vmatprep.subr.bf16.mxu0 %v2829_v8  ;;  %v706_v8 = vrot.slane %v697_v5, %v3459_v57  ;;  %v2885_v5 = vld [vmem:[#allocation5] ss:$8 sps:$4 sm:$0xff]  }
 0x125   : > { %v624_v15 = vpop.permute.xlu1 %623  ;;  %v673_v26 = vmax.f32 %v665_v19, 0.0 }
 0x126   : > { %v643_v17 = vmul.f32 %v3478_v6, %v624_v15 }
 0x127   : > { %1378 = vmatpush1.bf16.msra.mxu0 %v2827_v11 }
 0x128   : > { %v651_v20 = vadd.f32 %v643_v17, %v599_v16  ;;  %1379 = vmatprep.subr.bf16.mxu0 %v2835_v13 }
 0x12a   : > { %v666_v22 = vadd.f32 %v3486_v14, %v651_v20  ;;  %v531_v23 = vpop.permute.xlu1 %530 }
 0x12b   : > { %1380 = vmatpush1.bf16.msra.mxu0 %v2833_v18  ;;  %v548_v35 = vmul.f32 %v3472_v0, %v531_v23 }
 0x12c   : > { %v674_v27 = vmax.f32 %v666_v22, 0.0  ;;  %1381 = vmatprep.subr.bf16.mxu0 %v2841_v21 }
 0x12e   : > { %v679_v29 = vpack.c.bf16 %v674_v27, %v673_v26 }
 0x12f   : > { %v576_v30 = vpop.permute.xlu1 %575  ;;  %1382 = vmatpush1.bf16.msra.mxu0 %v2839_v25 }
 0x130   : > { %v592_v32 = vmul.f32 %v3469_v63, %v576_v30  ;;  %842 = vmatmul.mubr.bf16.gmra.mrb[8].mxu0 %v679_v29  ;;  %1383 = vmatprep.subr.bf16.mxu0 %v2847_v28 }
 0x131   : > { %851 = vmatprep.mubr.bf16.mxu0 %v3171_v1 }
 0x132   : > { %v600_v36 = vadd.f32 %v592_v32, %v548_v35 }
 0x133   : > { %v580_v38 = vpop.permute.xlu1 %579  ;;  %1384 = vmatpush1.bf16.msra.mxu0 %v2845_v31 }
 0x134   : > { %1385 = vmatprep.subr.bf16.mxu0 %v2853_v34  ;;  %v593_v41 = vmul.f32 %v3469_v63, %v580_v38  ;;  %v652_v43 = vadd.f32 %v644_v37, %v600_v36 }
 0x136   : > { %v601_v47 = vadd.f32 %v593_v41, %v549_v42  ;;  %v667_v48 = vadd.f32 %v3486_v14, %v652_v43 }
 0x137   : > { %1386 = vmatpush1.bf16.msra.mxu0 %v2851_v39 }
 0x138   : > { %v632_v45 = vpop.permute.xlu1 %631  ;;  %1387 = vmatprep.subr.bf16.mxu0 %v2859_v40  ;;  %v675_v52 = vmax.f32 %v667_v48, 0.0 }
 0x139   : > { %v645_v1 = vmul.f32 %v3478_v6, %v632_v45  ;;  %v2873_v6 = vld [vmem:[#allocation2 + $0x1c4] ss:$16 sps:$4 sm:$0xff]  }
 0x13a   : > { %1320 = vmatprep.subr.bf16.mxu1 %v2873_v6 }
 0x13b   : > { %v653_v49 = vadd.f32 %v645_v1, %v601_v47  ;;  %1388 = vmatpush1.bf16.msra.mxu0 %v2857_v44  ;;  %1321 = vmatpush1.bf16.msra.mxu1 %v2878_v61 }
 0x13c   : > { %1389 = vmatprep.subr.bf16.mxu0 %v2865_v46  ;;  %1322 = vmatprep.subr.bf16.mxu1 %v2879_v2 }
 0x13d   : > { %v668_v63 = vadd.f32 %v3486_v14, %v653_v49  ;;  %v2883_v14 = vld [vmem:[#allocation2 + $0x1ec] ss:$16 sps:$4 sm:$0xff]  }
 0x13f   : > { %v676_v0 = vmax.f32 %v668_v63, 0.0  ;;  %1390 = vmatpush1.bf16.msra.mxu0 %v2863_v50  ;;  %1323 = vmatpush1.bf16.msra.mxu1 %v2884_v4  ;;  %v2887_v4 = vld [vmem:[#allocation5 + $0x4] ss:$8 sps:$4 sm:$0xff]  }
 0x140   : > { %1391 = vmatprep.subr.bf16.mxu0 %v2871_v51  ;;  %1943 = vmatprep.subr.bf16.mxu1 %v2887_v4 }
 0x141   : > { %v680_v55 = vpack.c.bf16 %v676_v0, %v675_v52 }
 0x143   : > { %852 = vmatmul.mubr.bf16.gmra.mrb[12].mxu0 %v680_v55 }
 0x144   : > { %1392 = vmatpush1.bf16.msra.mxu0 %v2869_v53 }
 0x145   : > { %1393 = vmatprep.subr.bf16.mxu0 %v2877_v58 }
 0x148   : > { %1394 = vmatpush1.bf16.msra.mxu0 %v2875_v60 }
 0x149   : > { %1395 = vmatprep.subr.bf16.mxu0 %v2883_v14 }
 0x14c   : > { %1396 = vmatpush1.bf16.msra.mxu0 %v2881_v3 }
 0x1e1   : > { %v823_v9 = vpop.f32.mrb[0].mxu0 }
 0x1e2   : > { %v824_v10 = vadd.f32 %v823_v9, %v702_v7  ;;  %v825_v11 = vpop.f32.mrb[1].mxu0  ;;  %v2890_v9 = vld [vmem:[#allocation5 + $0x14] ss:$8 sps:$4 sm:$0xff]  }
 0x1e3   : > { %v826_v12 = vadd.f32 %v825_v11, %v706_v8  ;;  %v827_v13 = vpop.f32.mrb[2].mxu0  ;;  %v2896_v11 = vld [vmem:[#allocation5 + $0x34] ss:$8 sps:$4 sm:$0xff]  }
 0x1e4   : > { %v828_v15 = vadd.f32 %v827_v13, %v702_v7  ;;  %v829_v16 = vpop.f32.mrb[3].mxu0  ;;  %v862_v18 = vmax.f32 %v824_v10, 0.0  ;;  %v2888_v10 = vld [vmem:[#allocation5 + $0x10] ss:$8 sps:$4 sm:$0xff]   ;;  %v2899_v13 = vld [vmem:[#allocation5 + $0x44] ss:$8 sps:$4 sm:$0xff]  }
 0x1e5   : > { %v830_v17 = vadd.f32 %v829_v16, %v706_v8  ;;  %v863_v20 = vmax.f32 %v826_v12, 0.0  ;;  %v2894_v12 = vld [vmem:[#allocation5 + $0x30] ss:$8 sps:$4 sm:$0xff]   ;;  %v2902_v16 = vld [vmem:[#allocation5 + $0x54] ss:$8 sps:$4 sm:$0xff]  }
 0x1e6   : > { %v864_v19 = vmax.f32 %v828_v15, 0.0  ;;  %v2897_v15 = vld [vmem:[#allocation5 + $0x40] ss:$8 sps:$4 sm:$0xff]  }
 0x1e7   : > { %v865_v21 = vmax.f32 %v830_v17, 0.0  ;;  %v2900_v17 = vld [vmem:[#allocation5 + $0x50] ss:$8 sps:$4 sm:$0xff]  }
 0x1e8   : > { %v878_v22 = vpack.c.bf16 %v864_v19, %v862_v18  ;;  %v2905_v18 = vld [vmem:[#allocation5 + $0x64] ss:$8 sps:$4 sm:$0xff]   ;;  %v2903_v19 = vld [vmem:[#allocation5 + $0x60] ss:$8 sps:$4 sm:$0xff]  }
 0x1e9   : > { %v879_v23 = vpack.c.bf16 %v865_v21, %v863_v20  ;;  %v2908_v20 = vld [vmem:[#allocation5 + $0x74] ss:$8 sps:$4 sm:$0xff]   ;;  %v2906_v21 = vld [vmem:[#allocation5 + $0x70] ss:$8 sps:$4 sm:$0xff]  }
 0x1eb   : > { %1324 = vmatprep.mubr.bf16.mxu1 %v879_v23  ;;  %1397 = vmatprep.mubr.bf16.mxu0 %v879_v23  ;;  %v2909_v23 = vld [vmem:[#allocation5 + $0x80] ss:$8 sps:$4 sm:$0xff]  }
 0x1ec   : > { %1325 = vmatmul.mubr.bf16.vlgmr.msra.gmra.mrb[0].mxu1 %v878_v22  ;;  %1398 = vmatmul.mubr.bf16.vlgmr.msra.gmra.mrb[16].mxu0 %v878_v22  ;;  %v2911_v22 = vld [vmem:[#allocation5 + $0x84] ss:$8 sps:$4 sm:$0xff]  }
 0x1ed   : > { %1944 = vmatpush1.bf16.msra.mxu1 %v2885_v5 }
 0x1ee   : > { %1945 = vmatprep.subr.bf16.mxu1 %v2890_v9 }
 0x1f0   : > { %v833_v24 = vpop.f32.mrb[4].mxu0 }
 0x1f1   : > { %v834_v25 = vadd.f32 %v833_v24, %v702_v7  ;;  %v835_v26 = vpop.f32.mrb[5].mxu0  ;;  %1946 = vmatpush1.bf16.msra.mxu1 %v2888_v10  ;;  %v2914_v24 = vld [vmem:[#allocation5 + $0x94] ss:$8 sps:$4 sm:$0xff]  }
 0x1f2   : > { %v836_v27 = vadd.f32 %v835_v26, %v706_v8  ;;  %v837_v28 = vpop.f32.mrb[6].mxu0  ;;  %v2917_v26 = vld [vmem:[#allocation5 + $0xa4] ss:$8 sps:$4 sm:$0xff]  }
 0x1f3   : > { %v838_v29 = vadd.f32 %v837_v28, %v702_v7  ;;  %v839_v30 = vpop.f32.mrb[7].mxu0  ;;  %v866_v32 = vmax.f32 %v834_v25, 0.0  ;;  %v2912_v25 = vld [vmem:[#allocation5 + $0x90] ss:$8 sps:$4 sm:$0xff]   ;;  %v2920_v28 = vld [vmem:[#allocation5 + $0xb4] ss:$8 sps:$4 sm:$0xff]  }
 0x1f4   : > { %v840_v31 = vadd.f32 %v839_v30, %v706_v8  ;;  %v867_v34 = vmax.f32 %v836_v27, 0.0  ;;  %v2915_v27 = vld [vmem:[#allocation5 + $0xa0] ss:$8 sps:$4 sm:$0xff]   ;;  %v2923_v30 = vld [vmem:[#allocation5 + $0xc4] ss:$8 sps:$4 sm:$0xff]  }
 0x1f5   : > { %v868_v33 = vmax.f32 %v838_v29, 0.0  ;;  %v2918_v29 = vld [vmem:[#allocation5 + $0xb0] ss:$8 sps:$4 sm:$0xff]  }
 0x1f6   : > { %v869_v35 = vmax.f32 %v840_v31, 0.0  ;;  %v2921_v31 = vld [vmem:[#allocation5 + $0xc0] ss:$8 sps:$4 sm:$0xff]  }
 0x1f7   : > { %v880_v36 = vpack.c.bf16 %v868_v33, %v866_v32  ;;  %v2926_v32 = vld [vmem:[#allocation5 + $0xd4] ss:$8 sps:$4 sm:$0xff]   ;;  %v2924_v33 = vld [vmem:[#allocation5 + $0xd0] ss:$8 sps:$4 sm:$0xff]  }
 0x1f8   : > { %v881_v37 = vpack.c.bf16 %v869_v35, %v867_v34  ;;  %v2929_v34 = vld [vmem:[#allocation5 + $0xe4] ss:$8 sps:$4 sm:$0xff]   ;;  %v2927_v35 = vld [vmem:[#allocation5 + $0xe0] ss:$8 sps:$4 sm:$0xff]  }
 0x1fa   : > { %1334 = vmatprep.mubr.bf16.mxu1 %v881_v37  ;;  %1407 = vmatprep.mubr.bf16.mxu0 %v881_v37  ;;  %v2932_v37 = vld [vmem:[#allocation5 + $0xf4] ss:$8 sps:$4 sm:$0xff]  }
 0x1fb   : > { %1335 = vmatmul.mubr.bf16.gmra.mrb[4].mxu1 %v880_v36  ;;  %1408 = vmatmul.mubr.bf16.gmra.mrb[20].mxu0 %v880_v36  ;;  %v2930_v36 = vld [vmem:[#allocation5 + $0xf0] ss:$8 sps:$4 sm:$0xff]  }
 0x203   : > { %v843_v38 = vpop.f32.mrb[8].mxu0 }
 0x204   : > { %v844_v39 = vadd.f32 %v843_v38, %v702_v7  ;;  %v845_v40 = vpop.f32.mrb[9].mxu0  ;;  %v2935_v38 = vld [vmem:[#allocation5 + $0x104] ss:$8 sps:$4 sm:$0xff]  }
 0x205   : > { %v846_v41 = vadd.f32 %v845_v40, %v706_v8  ;;  %v847_v42 = vpop.f32.mrb[10].mxu0  ;;  %v966_v40 = vsub.s32 3, %v3456_v54 }
 0x206   : > { %v848_v43 = vadd.f32 %v847_v42, %v702_v7  ;;  %v849_v44 = vpop.f32.mrb[11].mxu0  ;;  %v870_v46 = vmax.f32 %v844_v39, 0.0  ;;  %v950_v39 = vld [vmem:[%s3663_s6] sm:$0xf] }
 0x207   : > { %v850_v45 = vadd.f32 %v849_v44, %v706_v8  ;;  %v871_v1 = vmax.f32 %v846_v41, 0.0  ;;  %v3528_v41 = vrot.slane %v950_v39, %v3462_v59  ;;  %v3532_v42 = vrot.slane %v950_v39, %v636_v62 }
 0x208   : > { %v872_v47 = vmax.f32 %v848_v43, 0.0 }
 0x209   : > { %v873_v48 = vmax.f32 %v850_v45, 0.0  ;;  %v3535_v45 = vrot.slane %v950_v39, %v3459_v57 }
 0x20a   : > { %v882_v49 = vpack.c.bf16 %v872_v47, %v870_v46  ;;  %v3537_v46 = vrot.slane %v950_v39, %v966_v40 }
 0x20b   : > { %v883_v50 = vpack.c.bf16 %v873_v48, %v871_v1 }
 0x20d   : > { %1344 = vmatprep.mubr.bf16.mxu1 %v883_v50  ;;  %1417 = vmatprep.mubr.bf16.mxu0 %v883_v50 }
 0x20e   : > { %1345 = vmatmul.mubr.bf16.gmra.mrb[8].mxu1 %v882_v49  ;;  %1418 = vmatmul.mubr.bf16.gmra.mrb[24].mxu0 %v882_v49 }
 0x216   : > { %v853_v51 = vpop.f32.mrb[12].mxu0 }
 0x217   : > { %v854_v63 = vadd.f32 %v853_v51, %v702_v7  ;;  %v855_v52 = vpop.f32.mrb[13].mxu0 }
 0x218   : > { %v856_v0 = vadd.f32 %v855_v52, %v706_v8  ;;  %v857_v53 = vpop.f32.mrb[14].mxu0 }
 0x219   : > { %v858_v55 = vadd.f32 %v857_v53, %v702_v7  ;;  %v859_v56 = vpop.f32.mrb[15].mxu0  ;;  %v874_v58 = vmax.f32 %v854_v63, 0.0  ;;  %v2893_v7 = vld [vmem:[#allocation5 + $0x24] ss:$8 sps:$4 sm:$0xff]  }
 0x21a   : > { %v860_v6 = vadd.f32 %v859_v56, %v706_v8  ;;  %v875_v61 = vmax.f32 %v856_v0, 0.0  ;;  %v2891_v8 = vld [vmem:[#allocation5 + $0x20] ss:$8 sps:$4 sm:$0xff]   ;;  %1947 = vmatprep.subr.bf16.mxu1 %v2893_v7 }
 0x21b   : > { %v876_v60 = vmax.f32 %v858_v55, 0.0  ;;  %1948 = vmatpush1.bf16.msra.mxu1 %v2891_v8 }
 0x21c   : > { %v877_v2 = vmax.f32 %v860_v6, 0.0  ;;  %1949 = vmatprep.subr.bf16.mxu1 %v2896_v11 }
 0x21d   : > { %v884_v14 = vpack.c.bf16 %v876_v60, %v874_v58 }
 0x21e   : > { %v885_v3 = vpack.c.bf16 %v877_v2, %v875_v61 }
 0x21f   : > { %1950 = vmatpush1.bf16.msra.mxu1 %v2894_v12  ;;  %v2981_v12 = vld [vmem:[#allocation7 + $0x40] sm:$0xff]  }
 0x220   : > { %1354 = vmatprep.mubr.bf16.mxu1 %v885_v3  ;;  %1427 = vmatprep.mubr.bf16.mxu0 %v885_v3 }
 0x221   : > { %1355 = vmatmul.mubr.bf16.gmra.mrb[12].mxu1 %v884_v14  ;;  %1428 = vmatmul.mubr.bf16.gmra.mrb[28].mxu0 %v884_v14 }
 0x222   : > { %1951 = vmatprep.subr.bf16.mxu1 %v2899_v13  ;;  %v2982_v13 = vld [vmem:[#allocation7] sm:$0xff]   ;;  %2612 = vmatprep.subr.bf16.mxu0 %v2981_v12 }
 0x223   : > { %1952 = vmatpush1.bf16.msra.mxu1 %v2897_v15  ;;  %v2983_v15 = vld [vmem:[#allocation7 + $0x48] sm:$0xff]   ;;  %2613 = vmatpush3.bf16.msra.mxu0 %v2982_v13 }
 0x224   : > { %1953 = vmatprep.subr.bf16.mxu1 %v2902_v16  ;;  %2614 = vmatprep.subr.bf16.mxu0 %v2983_v15 }
 0x227   : > { %1954 = vmatpush1.bf16.msra.mxu1 %v2900_v17 }
 0x228   : > { %1955 = vmatprep.subr.bf16.mxu1 %v2905_v18 }
 0x22b   : > { %1956 = vmatpush1.bf16.msra.mxu1 %v2903_v19 }
 0x22c   : > { %1957 = vmatprep.subr.bf16.mxu1 %v2908_v20 }
 0x22f   : > { %1958 = vmatpush1.bf16.msra.mxu1 %v2906_v21 }
 0x230   : > { %1959 = vmatprep.subr.bf16.mxu1 %v2911_v22 }
 0x233   : > { %1960 = vmatpush1.bf16.msra.mxu1 %v2909_v23 }
 0x234   : > { %1961 = vmatprep.subr.bf16.mxu1 %v2914_v24 }
 0x237   : > { %1962 = vmatpush1.bf16.msra.mxu1 %v2912_v25 }
 0x238   : > { %1963 = vmatprep.subr.bf16.mxu1 %v2917_v26 }
 0x23b   : > { %1964 = vmatpush1.bf16.msra.mxu1 %v2915_v27 }
 0x23c   : > { %1965 = vmatprep.subr.bf16.mxu1 %v2920_v28  ;;  %v2984_v28 = vld [vmem:[#allocation7 + $0x8] sm:$0xff]  }
 0x23d   : > { %2615 = vmatpush3.bf16.msra.mxu0 %v2984_v28 }
 0x23f   : > { %1966 = vmatpush1.bf16.msra.mxu1 %v2918_v29 }
 0x240   : > { %1967 = vmatprep.subr.bf16.mxu1 %v2923_v30 }
 0x243   : > { %1968 = vmatpush1.bf16.msra.mxu1 %v2921_v31  ;;  %v2985_v31 = vld [vmem:[#allocation7 + $0x50] sm:$0xff]  }
 0x244   : > { %1969 = vmatprep.subr.bf16.mxu1 %v2926_v32  ;;  %v2986_v32 = vld [vmem:[#allocation7 + $0x10] sm:$0xff]   ;;  %2616 = vmatprep.subr.bf16.mxu0 %v2985_v31 }
 0x245   : > { %2617 = vmatpush3.bf16.msra.mxu0 %v2986_v32 }
 0x247   : > { %1970 = vmatpush1.bf16.msra.mxu1 %v2924_v33  ;;  %v2987_v33 = vld [vmem:[#allocation7 + $0x58] sm:$0xff]  }
 0x248   : > { %1971 = vmatprep.subr.bf16.mxu1 %v2929_v34  ;;  %v2988_v34 = vld [vmem:[#allocation7 + $0x18] sm:$0xff]   ;;  %2618 = vmatprep.subr.bf16.mxu0 %v2987_v33 }
 0x249   : > { %2619 = vmatpush3.bf16.msra.mxu0 %v2988_v34 }
 0x24b   : > { %1972 = vmatpush1.bf16.msra.mxu1 %v2927_v35  ;;  %v2989_v35 = vld [vmem:[#allocation7 + $0x60] sm:$0xff]  }
 0x24c   : > { %1973 = vmatprep.subr.bf16.mxu1 %v2932_v37  ;;  %2620 = vmatprep.subr.bf16.mxu0 %v2989_v35  ;;  %v2991_v37 = vld [vmem:[#allocation7 + $0x68] sm:$0xff]  }
 0x24f   : > { %1974 = vmatpush1.bf16.msra.mxu1 %v2930_v36  ;;  %v2990_v36 = vld [vmem:[#allocation7 + $0x20] sm:$0xff]  }
 0x250   : > { %1984 = vmatprep.subr.bf16.mxu1 %v2935_v38  ;;  %2621 = vmatpush3.bf16.msra.mxu0 %v2990_v36 }
 0x251   : > { %2622 = vmatprep.subr.bf16.mxu0 %v2991_v37 }
 0x2bf   : > { %v1326_v43 = vpop.f32.mrb[0].mxu1  ;;  %v1399_v44 = vpop.f32.mrb[16].mxu0 }
 0x2c0   : > { %v1328_v47 = vpop.f32.mrb[1].mxu1  ;;  %v1401_v1 = vpop.f32.mrb[17].mxu0  ;;  %v1327_v50 = vadd.f32 %v1326_v43, %v3528_v41  ;;  %v1400_v51 = vadd.f32 %v1399_v44, %v3532_v42 }
 0x2c1   : > { %v1330_v48 = vpop.f32.mrb[2].mxu1  ;;  %v1403_v49 = vpop.f32.mrb[18].mxu0  ;;  %v1329_v0 = vadd.f32 %v1328_v47, %v3535_v45  ;;  %v1402_v53 = vadd.f32 %v1401_v1, %v3537_v46  ;;  %v2992_v1 = vld [vmem:[#allocation7 + $0x28] sm:$0xff]  }
 0x2c2   : > { %v1331_v63 = vadd.f32 %v1330_v48, %v3528_v41  ;;  %v1404_v54 = vadd.f32 %v1403_v49, %v3532_v42  ;;  %v1332_v62 = vpop.f32.mrb[3].mxu1  ;;  %v1405_v52 = vpop.f32.mrb[19].mxu0  ;;  %2623 = vmatpush3.bf16.msra.mxu0 %v2992_v1 }
 0x2c3   : > { %v1333_v55 = vadd.f32 %v1332_v62, %v3535_v45  ;;  %v1406_v56 = vadd.f32 %v1405_v52, %v3537_v46 }
 0x2c4   : > { %v1438_v6 = vmax.f32 %v1327_v50, %v1331_v63  ;;  %v1456_v58 = vmax.f32 %v1400_v51, %v1404_v54 }
 0x2c5   : > { %v1447_v60 = vmax.f32 %v1329_v0, %v1333_v55  ;;  %v1465_v61 = vmax.f32 %v1402_v53, %v1406_v56 }
 0x2ce   : > { %v1336_v2 = vpop.f32.mrb[4].mxu1  ;;  %v1409_v14 = vpop.f32.mrb[20].mxu0 }
 0x2cf   : > { %v1337_v3 = vadd.f32 %v1336_v2, %v3528_v41  ;;  %v1410_v4 = vadd.f32 %v1409_v14, %v3532_v42  ;;  %v1338_v5 = vpop.f32.mrb[5].mxu1  ;;  %v1411_v9 = vpop.f32.mrb[21].mxu0 }
 0x2d0   : > { %v1339_v10 = vadd.f32 %v1338_v5, %v3535_v45  ;;  %v1412_v7 = vadd.f32 %v1411_v9, %v3537_v46  ;;  %v1340_v8 = vpop.f32.mrb[6].mxu1  ;;  %v1413_v11 = vpop.f32.mrb[22].mxu0 }
 0x2d1   : > { %v1439_v16 = vmax.f32 %v1438_v6, %v1337_v3  ;;  %v1457_v17 = vmax.f32 %v1456_v58, %v1410_v4  ;;  %v1341_v18 = vadd.f32 %v1340_v8, %v3528_v41  ;;  %v1414_v19 = vadd.f32 %v1413_v11, %v3532_v42  ;;  %v1342_v20 = vpop.f32.mrb[7].mxu1  ;;  %v1415_v21 = vpop.f32.mrb[23].mxu0 }
 0x2d2   : > { %v1448_v22 = vmax.f32 %v1447_v60, %v1339_v10  ;;  %v1466_v23 = vmax.f32 %v1465_v61, %v1412_v7  ;;  %v1343_v24 = vadd.f32 %v1342_v20, %v3535_v45  ;;  %v1416_v25 = vadd.f32 %v1415_v21, %v3537_v46 }
 0x2d3   : > { %v1440_v26 = vmax.f32 %v1439_v16, %v1341_v18  ;;  %v1458_v27 = vmax.f32 %v1457_v17, %v1414_v19 }
 0x2d4   : > { %v1449_v29 = vmax.f32 %v1448_v22, %v1343_v24  ;;  %v1467_v30 = vmax.f32 %v1466_v23, %v1416_v25 }
 0x2d5   : > { %v1441_v60 = vrot.slane %v1440_v26, 4  ;;  %v1459_v61 = vrot.slane %v1458_v27, 4 }
 0x2d6   : > { %v1450_v2 = vrot.slane %v1449_v29, 4  ;;  %v1468_v14 = vrot.slane %v1467_v30, 4 }
 0x2d7   : > { %v1442_v3 = vmax.f32 %v1440_v26, %v1441_v60  ;;  %v1460_v4 = vmax.f32 %v1458_v27, %v1459_v61 }
 0x2d8   : > { %v1451_v5 = vmax.f32 %v1449_v29, %v1450_v2  ;;  %v1469_v9 = vmax.f32 %v1467_v30, %v1468_v14 }
 0x2d9   : > { %v1443_v8 = vrot.slane %v1442_v3, 2  ;;  %v1461_v11 = vrot.slane %v1460_v4, 2 }
 0x2da   : > { %v1452_v17 = vrot.slane %v1451_v5, 2  ;;  %v1470_v18 = vrot.slane %v1469_v9, 2 }
 0x2db   : > { %v1444_v33 = vmax.f32 %v1442_v3, %v1443_v8  ;;  %v1462_v34 = vmax.f32 %v1460_v4, %v1461_v11 }
 0x2dc   : > { %v1453_v37 = vmax.f32 %v1451_v5, %v1452_v17 }
 0x2dd   : > { %v1463_v1 = vrot.slane %v1462_v34, 1 }
 0x2e1   : > { %v1346_v38 = vpop.f32.mrb[8].mxu1  ;;  %v1419_v39 = vpop.f32.mrb[24].mxu0 }
 0x2e2   : > { %v1348_v40 = vpop.f32.mrb[9].mxu1  ;;  %v1421_v43 = vpop.f32.mrb[25].mxu0  ;;  %v1347_v48 = vadd.f32 %v1346_v38, %v3528_v41  ;;  %v1420_v49 = vadd.f32 %v1419_v39, %v3532_v42  ;;  %v1471_v38 = vmax.f32 %v1469_v9, %v1470_v18 }
 0x2e3   : > { %v1350_v44 = vpop.f32.mrb[10].mxu1  ;;  %v1423_v47 = vpop.f32.mrb[26].mxu0  ;;  %v1349_v62 = vadd.f32 %v1348_v40, %v3535_v45  ;;  %v1422_v52 = vadd.f32 %v1421_v43, %v3537_v46 }
 0x2e4   : > { %v1351_v50 = vadd.f32 %v1350_v44, %v3528_v41  ;;  %v1424_v51 = vadd.f32 %v1423_v47, %v3532_v42  ;;  %v1352_v63 = vpop.f32.mrb[11].mxu1  ;;  %v1425_v54 = vpop.f32.mrb[27].mxu0  ;;  %v1445_v47 = vrot.slane %v1444_v33, 1 }
 0x2e5   : > { %v1353_v0 = vadd.f32 %v1352_v63, %v3535_v45  ;;  %v1426_v53 = vadd.f32 %v1425_v54, %v3537_v46 }
 0x2e6   : > { %v1474_v55 = vmax.f32 %v1347_v48, %v1351_v50  ;;  %v1492_v56 = vmax.f32 %v1420_v49, %v1424_v51  ;;  %v1454_v50 = vrot.slane %v1453_v37, 1 }
 0x2e7   : > { %v1483_v6 = vmax.f32 %v1349_v62, %v1353_v0  ;;  %v1501_v58 = vmax.f32 %v1422_v52, %v1426_v53  ;;  %v1446_v0 = vmax.f32 %v1444_v33, %v1445_v47  ;;  %v1464_v53 = vmax.f32 %v1462_v34, %v1463_v1  ;;  %v2938_v34 = vld [vmem:[#allocation5 + $0x114] ss:$8 sps:$4 sm:$0xff]   ;;  %v2953_v47 = vld [vmem:[#allocation5 + $0x164] ss:$8 sps:$4 sm:$0xff]   ;;  %v2951_v1 = vld [vmem:[#allocation5 + $0x160] ss:$8 sps:$4 sm:$0xff]  }
 0x2e9   : > { %v1510_v5 = vpack.c.bf16 %v1446_v0, %v1446_v0  ;;  %v1512_v9 = vpack.c.bf16 %v1464_v53, %v1464_v53  ;;  %v2971_v0 = vld [vmem:[#allocation5 + $0x1c4] ss:$8 sps:$4 sm:$0xff]   ;;  %v2969_v53 = vld [vmem:[#allocation5 + $0x1c0] ss:$8 sps:$4 sm:$0xff]  }
 0x2f4   : > { %v1356_v10 = vpop.f32.mrb[12].mxu1  ;;  %v1429_v7 = vpop.f32.mrb[28].mxu0 }
 0x2f5   : > { %v1357_v12 = vadd.f32 %v1356_v10, %v3528_v41  ;;  %v1430_v13 = vadd.f32 %v1429_v7, %v3532_v42  ;;  %v1358_v15 = vpop.f32.mrb[13].mxu1  ;;  %v1431_v16 = vpop.f32.mrb[29].mxu0 }
 0x2f6   : > { %v1359_v19 = vadd.f32 %v1358_v15, %v3535_v45  ;;  %v1432_v20 = vadd.f32 %v1431_v16, %v3537_v46  ;;  %v1360_v21 = vpop.f32.mrb[14].mxu1  ;;  %v1433_v22 = vpop.f32.mrb[30].mxu0 }
 0x2f7   : > { %v1475_v23 = vmax.f32 %v1474_v55, %v1357_v12  ;;  %v1493_v24 = vmax.f32 %v1492_v56, %v1430_v13  ;;  %v1361_v25 = vadd.f32 %v1360_v21, %v3528_v41  ;;  %v1434_v26 = vadd.f32 %v1433_v22, %v3532_v42  ;;  %v1362_v27 = vpop.f32.mrb[15].mxu1  ;;  %v1435_v28 = vpop.f32.mrb[31].mxu0 }
 0x2f8   : > { %v1484_v29 = vmax.f32 %v1483_v6, %v1359_v19  ;;  %v1502_v30 = vmax.f32 %v1501_v58, %v1432_v20  ;;  %v1363_v31 = vadd.f32 %v1362_v27, %v3535_v45  ;;  %v1436_v32 = vadd.f32 %v1435_v28, %v3537_v46 }
 0x2f9   : > { %v1476_v35 = vmax.f32 %v1475_v23, %v1361_v25  ;;  %v1494_v36 = vmax.f32 %v1493_v24, %v1434_v26  ;;  %v1472_v45 = vrot.slane %v1471_v38, 1  ;;  %v1455_v6 = vmax.f32 %v1453_v37, %v1454_v50  ;;  %v2941_v37 = vld [vmem:[#allocation5 + $0x124] ss:$8 sps:$4 sm:$0xff]  }
 0x2fa   : > { %v1485_v39 = vmax.f32 %v1484_v29, %v1363_v31  ;;  %v1503_v40 = vmax.f32 %v1502_v30, %v1436_v32  ;;  %v1602_v19 = vunpack.c.l.b16 %v1510_v5  ;;  %v1604_v20 = vunpack.c.l.b16 %v1512_v9  ;;  %v2933_v32 = vld [vmem:[#allocation5 + $0x100] ss:$8 sps:$4 sm:$0xff]   ;;  %v2959_v50 = vld [vmem:[#allocation5 + $0x184] ss:$8 sps:$4 sm:$0xff]   ;;  %v2996_v5 = vld [vmem:[#allocation7 + $0x38] sm:$0xff]  }
 0x2fb   : > { %v1477_v43 = vrot.slane %v1476_v35, 4  ;;  %v1495_v41 = vrot.slane %v1494_v36, 4  ;;  %v1473_v58 = vmax.f32 %v1471_v38, %v1472_v45  ;;  %v1511_v8 = vpack.c.bf16 %v1455_v6, %v1455_v6  ;;  %v2939_v38 = vld [vmem:[#allocation5 + $0x120] ss:$8 sps:$4 sm:$0xff]   ;;  %v2977_v6 = vld [vmem:[#allocation5 + $0x1e4] ss:$8 sps:$4 sm:$0xff]  }
 0x2fc   : > { %v1486_v44 = vrot.slane %v1485_v39, 4  ;;  %v1504_v42 = vrot.slane %v1503_v40, 4  ;;  %v2957_v45 = vld [vmem:[#allocation5 + $0x180] ss:$8 sps:$4 sm:$0xff]   ;;  %v3173_v9 = vmov 0.0  }
 0x2fd   : > { %v1478_v48 = vmax.f32 %v1476_v35, %v1477_v43  ;;  %v1496_v49 = vmax.f32 %v1494_v36, %v1495_v41  ;;  %v1513_v11 = vpack.c.bf16 %v1473_v58, %v1473_v58  ;;  %v1603_v23 = vunpack.c.l.b16 %v1511_v8  ;;  %v2936_v36 = vld [vmem:[#allocation5 + $0x110] ss:$8 sps:$4 sm:$0xff]   ;;  %v2947_v43 = vld [vmem:[#allocation5 + $0x144] ss:$8 sps:$4 sm:$0xff]   ;;  %v2945_v41 = vld [vmem:[#allocation5 + $0x140] ss:$8 sps:$4 sm:$0xff]  }
 0x2fe   : > { %v1487_v51 = vmax.f32 %v1485_v39, %v1486_v44  ;;  %v1505_v46 = vmax.f32 %v1503_v40, %v1504_v42  ;;  %v2944_v39 = vld [vmem:[#allocation5 + $0x134] ss:$8 sps:$4 sm:$0xff]   ;;  %v2942_v40 = vld [vmem:[#allocation5 + $0x130] ss:$8 sps:$4 sm:$0xff]   ;;  %v2975_v58 = vld [vmem:[#allocation5 + $0x1e0] ss:$8 sps:$4 sm:$0xff]  }
 0x2ff   : > { %v1479_v63 = vrot.slane %v1478_v48, 2  ;;  %v1497_v54 = vrot.slane %v1496_v49, 2  ;;  %v1605_v25 = vunpack.c.l.b16 %v1513_v11  ;;  %v2950_v44 = vld [vmem:[#allocation5 + $0x154] ss:$8 sps:$4 sm:$0xff]   ;;  %v2948_v42 = vld [vmem:[#allocation5 + $0x150] ss:$8 sps:$4 sm:$0xff]  }
 0x300   : > { %v1488_v62 = vrot.slane %v1487_v51, 2  ;;  %v1506_v52 = vrot.slane %v1505_v46, 2 }
 0x301   : > { %v1480_v55 = vmax.f32 %v1478_v48, %v1479_v63  ;;  %v1498_v56 = vmax.f32 %v1496_v49, %v1497_v54  ;;  %v2956_v48 = vld [vmem:[#allocation5 + $0x174] ss:$8 sps:$4 sm:$0xff]   ;;  %v2954_v49 = vld [vmem:[#allocation5 + $0x170] ss:$8 sps:$4 sm:$0xff]   ;;  %v2965_v63 = vld [vmem:[#allocation5 + $0x1a4] ss:$8 sps:$4 sm:$0xff]  }
 0x302   : > { %v1489_v60 = vmax.f32 %v1487_v51, %v1488_v62  ;;  %v1507_v61 = vmax.f32 %v1505_v46, %v1506_v52  ;;  %v2962_v51 = vld [vmem:[#allocation5 + $0x194] ss:$8 sps:$4 sm:$0xff]   ;;  %v2960_v46 = vld [vmem:[#allocation5 + $0x190] ss:$8 sps:$4 sm:$0xff]   ;;  %v2963_v54 = vld [vmem:[#allocation5 + $0x1a0] ss:$8 sps:$4 sm:$0xff]  }
 0x303   : > { %v1481_v2 = vrot.slane %v1480_v55, 1  ;;  %v1499_v14 = vrot.slane %v1498_v56, 1  ;;  %v2968_v62 = vld [vmem:[#allocation5 + $0x1b4] ss:$8 sps:$4 sm:$0xff]   ;;  %v2966_v52 = vld [vmem:[#allocation5 + $0x1b0] ss:$8 sps:$4 sm:$0xff]  }
 0x304   : > { %v1490_v3 = vrot.slane %v1489_v60, 1  ;;  %v1508_v4 = vrot.slane %v1507_v61, 1 }
 0x305   : > { %v1482_v10 = vmax.f32 %v1480_v55, %v1481_v2  ;;  %v1500_v7 = vmax.f32 %v1498_v56, %v1499_v14  ;;  %v2974_v55 = vld [vmem:[#allocation5 + $0x1d4] ss:$8 sps:$4 sm:$0xff]   ;;  %v2972_v56 = vld [vmem:[#allocation5 + $0x1d0] ss:$8 sps:$4 sm:$0xff]  }
 0x306   : > { %v1491_v12 = vmax.f32 %v1489_v60, %v1490_v3  ;;  %v1509_v13 = vmax.f32 %v1507_v61, %v1508_v4  ;;  %v2980_v60 = vld [vmem:[#allocation5 + $0x1f4] ss:$8 sps:$4 sm:$0xff]   ;;  %v2978_v61 = vld [vmem:[#allocation5 + $0x1f0] ss:$8 sps:$4 sm:$0xff]  }
 0x307   : > { %v1514_v15 = vpack.c.bf16 %v1482_v10, %v1482_v10  ;;  %v1516_v16 = vpack.c.bf16 %v1500_v7, %v1500_v7  ;;  %v2993_v14 = vld [vmem:[#allocation7 + $0x70] sm:$0xff]   ;;  %v2995_v4 = vld [vmem:[#allocation7 + $0x78] sm:$0xff]   ;;  %v1582_v10 = vld [vmem:[%s3665_s8] sm:$0x3] }
 0x308   : > { %v1515_v17 = vpack.c.bf16 %v1491_v12, %v1491_v12  ;;  %v1517_v18 = vpack.c.bf16 %v1509_v13, %v1509_v13  ;;  %v2994_v3 = vld [vmem:[#allocation7 + $0x30] sm:$0xff]   ;;  %2624 = vmatprep.subr.bf16.mxu0 %v2993_v14  ;;  %v1587_v7 = vrot.slane %v1582_v10, %v3462_v59  ;;  %v1591_v8 = vrot.slane %v1582_v10, %v3459_v57  ;;  %v2998_v57 = vld [vmem:[%s3668_s11 + $0x8] sm:$0xff]  }
 0x309   : > { %v1606_v21 = vunpack.c.l.b16 %v1514_v15  ;;  %v1608_v22 = vunpack.c.l.b16 %v1516_v16  ;;  %2625 = vmatpush3.bf16.msra.mxu0 %v2994_v3  ;;  %v2999_v59 = vld [vmem:[%s3668_s11 + $0x10] sm:$0xff]  }
 0x30a   : > { %v1607_v24 = vunpack.c.l.b16 %v1515_v17  ;;  %v1609_v26 = vunpack.c.l.b16 %v1517_v18  ;;  %2626 = vmatprep.subr.bf16.mxu0 %v2995_v4 }
 0x30b   : > { %v1611_v27 = vsel %vm1610_vm0, %v1606_v21, %v1602_v19  ;;  %v3571_v28 = vsel %vm1610_vm0, %v1608_v22, %v1604_v20  ;;  %v2997_v21 = vld [vmem:[%s3668_s11] sm:$0xff]  }
 0x30c   : > { %v1612_v29 = vsel %vm1610_vm0, %v1607_v24, %v1603_v23  ;;  %v1614_v30 = vsel %vm1610_vm0, %v1609_v26, %v1605_v25  ;;  %v1615_v33 = vpack.c.b16 %v1611_v27, %v1611_v27  ;;  %v1617_v2 = vpack.c.b16 %v3571_v28, %v3571_v28  ;;  %v3000_v23 = vld [vmem:[%s3668_s11 + $0x18] sm:$0xff]   ;;  %v3001_v24 = vld [vmem:[%s3668_s11 + $0x20] sm:$0xff]   ;;  %v3002_v25 = vld [vmem:[%s3668_s11 + $0x28] sm:$0xff]  }
 0x30d   : > { %v1616_v31 = vpack.c.b16 %v1612_v29, %v1612_v29  ;;  %v1618_v35 = vpack.c.b16 %v1614_v30, %v1614_v30  ;;  %2627 = vmatpush3.bf16.msra.mxu0 %v2996_v5  ;;  %v3003_v26 = vld [vmem:[%s3668_s11 + $0x30] sm:$0xff]   ;;  %v3004_v27 = vld [vmem:[%s3668_s11 + $0x38] sm:$0xff]   ;;  %v2581_v29 = vld [vmem:[%s3667_s10] ss:$0 sm:$0xff] }
 0x30e   : > { %2643 = vmatprep.subr.bf16.mxu0 %v3173_v9 }
 0x30f   : > { %1975 = vmatprep.mubr.bf16.mxu1 %v1616_v31 }
 0x310   : > { %1976 = vmatmul.mubr.bf16.vlgmr.msra.gmra.mrb[16].mxu1 %v1615_v33 }
 0x311   : > { %1985 = vmatpush1.bf16.msra.mxu1 %v2933_v32  ;;  %2016 = vmatprep.mubr.bf16.mxu1 %v1618_v35 }
 0x312   : > { %1986 = vmatprep.subr.bf16.mxu1 %v2938_v34 }
 0x315   : > { %1987 = vmatpush1.bf16.msra.mxu1 %v2936_v36  ;;  %v2598_v36 = vld [vmem:[%s3669_s12] ss:$0 sm:$0xff] }
 0x316   : > { %1988 = vmatprep.subr.bf16.mxu1 %v2941_v37 }
 0x319   : > { %1989 = vmatpush1.bf16.msra.mxu1 %v2939_v38 }
 0x31a   : > { %1990 = vmatprep.subr.bf16.mxu1 %v2944_v39 }
 0x31d   : > { %1991 = vmatpush1.bf16.msra.mxu1 %v2942_v40 }
 0x31e   : > { %1992 = vmatprep.subr.bf16.mxu1 %v2947_v43 }
 0x321   : > { %1993 = vmatpush1.bf16.msra.mxu1 %v2945_v41 }
 0x322   : > { %1994 = vmatprep.subr.bf16.mxu1 %v2950_v44 }
 0x325   : > { %1995 = vmatpush1.bf16.msra.mxu1 %v2948_v42 }
 0x326   : > { %1996 = vmatprep.subr.bf16.mxu1 %v2953_v47 }
 0x329   : > { %1997 = vmatpush1.bf16.msra.mxu1 %v2951_v1 }
 0x32a   : > { %1998 = vmatprep.subr.bf16.mxu1 %v2956_v48 }
 0x32d   : > { %1999 = vmatpush1.bf16.msra.mxu1 %v2954_v49 }
 0x32e   : > { %2000 = vmatprep.subr.bf16.mxu1 %v2959_v50 }
 0x331   : > { %2001 = vmatpush1.bf16.msra.mxu1 %v2957_v45 }
 0x332   : > { %2002 = vmatprep.subr.bf16.mxu1 %v2962_v51 }
 0x335   : > { %2003 = vmatpush1.bf16.msra.mxu1 %v2960_v46 }
 0x336   : > { %2004 = vmatprep.subr.bf16.mxu1 %v2965_v63 }
 0x339   : > { %2005 = vmatpush1.bf16.msra.mxu1 %v2963_v54 }
 0x33a   : > { %2006 = vmatprep.subr.bf16.mxu1 %v2968_v62 }
 0x33d   : > { %2007 = vmatpush1.bf16.msra.mxu1 %v2966_v52 }
 0x33e   : > { %2008 = vmatprep.subr.bf16.mxu1 %v2971_v0 }
 0x341   : > { %2009 = vmatpush1.bf16.msra.mxu1 %v2969_v53 }
 0x342   : > { %2010 = vmatprep.subr.bf16.mxu1 %v2974_v55 }
 0x345   : > { %2011 = vmatpush1.bf16.msra.mxu1 %v2972_v56 }
 0x346   : > { %2012 = vmatprep.subr.bf16.mxu1 %v2977_v6 }
 0x349   : > { %2013 = vmatpush1.bf16.msra.mxu1 %v2975_v58 }
 0x34a   : > { %2014 = vmatprep.subr.bf16.mxu1 %v2980_v60 }
 0x34d   : > { %2015 = vmatpush1.bf16.msra.mxu1 %v2978_v61 }
 0x350   : > { %2017 = vmatmul.mubr.bf16.vlgmr.msra.gmra.mrb[16].mxu1 %v1617_v2 }
 0x423   : > { %v2018_v11 = vpop.f32.mrb[16].mxu1 }
 0x424   : > { %v2663_v12 = vadd.f32 %v2018_v11, %v1587_v7  ;;  %v2020_v13 = vpop.f32.mrb[17].mxu1 }
 0x425   : > { %v2664_v15 = vadd.f32 %v2020_v13, %v1591_v8  ;;  %v2022_v16 = vpop.f32.mrb[18].mxu1 }
 0x426   : > { %v2025_v17 = vmax.f32 %v2663_v12, 0.0  ;;  %v2023_v18 = vpop.f32.mrb[19].mxu1 }
 0x427   : > { %v2026_v19 = vmax.f32 %v2664_v15, 0.0 }
 0x428   : > { %v2027_v22 = vpack.c.bf16 %v2025_v17, %v2025_v17 }
 0x429   : > { %v2028_v20 = vpack.c.bf16 %v2026_v19, %v2026_v19 }
 0x42b   : > { %2196 = vmatprep.mubr.bf16.mxu0 %v2028_v20 }
 0x42c   : > { %2197 = vmatmul.mubr.bf16.vlgmr.msra.gmra.mrb[32].mxu0 %v2027_v22 }
 0x42d   : > { %2644 = vmatpush3.bf16.msra.mxu0 %v2997_v21  ;;  %2659 = vmatprep.mubr.msk.bf16.mxu0 %vm3174_vm1, %v3173_v9 }
 0x42e   : > { %2645 = vmatprep.subr.bf16.mxu0 %v3173_v9 }
 0x431   : > { %2646 = vmatpush3.bf16.msra.mxu0 %v2998_v57 }
 0x432   : > { %2647 = vmatprep.subr.bf16.mxu0 %v3173_v9 }
 0x435   : > { %2648 = vmatpush3.bf16.msra.mxu0 %v2999_v59 }
 0x436   : > { %2649 = vmatprep.subr.bf16.mxu0 %v3173_v9 }
 0x439   : > { %2650 = vmatpush3.bf16.msra.mxu0 %v3000_v23 }
 0x43a   : > { %2651 = vmatprep.subr.bf16.mxu0 %v3173_v9 }
 0x43d   : > { %2652 = vmatpush3.bf16.msra.mxu0 %v3001_v24 }
 0x43e   : > { %2653 = vmatprep.subr.bf16.mxu0 %v3173_v9 }
 0x441   : > { %2654 = vmatpush3.bf16.msra.mxu0 %v3002_v25 }
 0x442   : > { %2655 = vmatprep.subr.bf16.mxu0 %v3173_v9 }
 0x445   : > { %2656 = vmatpush3.bf16.msra.mxu0 %v3003_v26 }
 0x446   : > { %2657 = vmatprep.subr.bf16.mxu0 %v3173_v9 }
 0x449   : > { %2658 = vmatpush3.bf16.msra.mxu0 %v3004_v27 }
 0x4ff   : > { %v2628_v28 = vpop.f32.mrb[32].mxu0 }
 0x500   : > { %v2629_v30 = vpop.f32.mrb[33].mxu0 }
 0x501   : > { %v2630_v31 = vadd.f32 %v2629_v30, %v2628_v28  ;;  %v2631_v32 = vpop.f32.mrb[34].mxu0 }
 0x502   : > { %v2632_v33 = vpop.f32.mrb[35].mxu0 }
 0x503   : > { %v2199_v34 = vadd.f32 %v2630_v31, %v2581_v29 }
 0x505   : > { %v2204_v35 = vpack.c.bf16 %v2199_v34, %v2199_v34 }
 0x507   : > { %2660 = vmatmul.mubr.bf16.vlgmr.msra.gmra.mrb[36].mxu0 %v2204_v35 }
 0x5da   : > { %v2310_v37 = vpop.f32.mrb[36].mxu0 }
 0x5db   : > { %v2311_v38 = vadd.f32 %v2598_v36, %v2310_v37  ;;  %v2661_v39 = vpop.f32.mrb[37].mxu0 }
 0x5dc   : > { %v2313_v40 = vpop.f32.mrb[38].mxu0 }
 0x5dd   : > { %v2662_v43 = vpop.f32.mrb[39].mxu0  ;;  %2317 = vst.msk [vmem:[%s480_s27] sm:$0x3] %vm2316_vm2, %v2311_v38 }
 0x5de   : > { %3102 = shalt.err (!%p3099_p11)
}
 0x5df   : > { %s3103_s25 = scalar_lea.hbm %s3615_s24, 32  ;;  %s3107_s23 = scalar_lea.hbm %s3704_s16, 64 }
 0x5e0   : > { %p3104_p13 = scmp.ne.s32.totalorder %s3615_s24, %s3103_s25  ;;  %p3108_p6 = scmp.lt.u32.totalorder %s3615_s24, %s3704_s16 }
 0x5e1   : > { %p3109_p9 = scmp.lt.u32.totalorder %s3107_s23, %s3103_s25  ;;  %p3111_p10 = scmp.lt.u32.totalorder %s3103_s25, %s3615_s24 }
 0x5e2   : > { %p3105_p5 = pnand %p3104_p13, %p3705_p1 }
 0x5e3   : > { %p3110_p12 = por %p3109_p9, %p3108_p6 }
 0x5e4   : > { %p3106_p0 = pneg %p3105_p5 }
 0x5e5   : > { %p3112_p2 = por %p3111_p10, %p3110_p12 }
 0x5e7   : > { %p3113_p3 = pnand %p3112_p2, %p3106_p0 }
 0x5e9   : > { %3116 = shalt.err (!%p3113_p3)
}
 0x5ea   : > { %2681 = dma.vmem_to_hbm [thread:$0]  (%p3705_p1), %s3617_s14, 32, %s3615_s24, %s2319_s29  }
 0x5eb PF: > { %s3706_s27 = sld [smem:[#allocation14_spill]]  ;;  %s3707_s19 = sld [smem:[#allocation12_spill]] }
 0x5ec   : > { %s3708_s17 = sld [smem:[#allocation18_spill]] }
 0x5f1   : > { %p2703_p4 = scmp.ge.s32.totalorder %s3706_s27, 2  ;;  %s2344_s15 = sand.u32 1, %s3707_s19  }
 0x5f2   : > { %p3709_p7 = scmp.ne.s32.totalorder %s3708_s17, 0  ;;  %s2345_s22 = scalar_lea.sflag [#allocation4], %s2344_s15 }
 0x5f4   : > { %p2694_p8 = pnand %p2703_p4, %p3709_p7 }
 0x5f6   : > { %3142 = dma.done.wait (!%p2694_p8), %s2345_s22, 32  }
 0x5f7   : > { %3144 = vsyncadd (!%p2694_p8), %s2345_s22, 4294967264  ;;  %s3710_s28 = sld [smem:[#allocation15_spill]]  ;;  %s3711_s30 = sld [smem:[#allocation13_spill]] }
 0x5f8   : > { %s3712_s27 = sld [smem:[#allocation16_spill]]  ;;  %s3713_s25 = smov %s3151_s26 }
 0x5fd   : > { %p25_p11 = scmp.ge.s32.totalorder %s3710_s28, 4   ;;  %s3714_s26 = smov %s3711_s30 }
 0x5ff   :  { %27 = sbr.rel (!%p25_p11) target bundleno = 8 (0x8), region = 120 }
 0x606   :  { %2350 = vsyncpa [#allocation3], 1 }
 0x607   :  { %2352 = vsyncpa [#allocation3 + $0x1], 1 }
 0x608   :  { %2353 = vsyncpa [#allocation6], 1 }
 0x609   :  { %2354 = vsyncpa [#allocation4], 1 }
 0x60a   :  { %2356 = vsyncpa [#allocation4 + $0x1], 1 }

</bundles_post_ra>
